<compile_context>
chip_gen: v7x
topology: tpu7x:2x2x1
jax: 0.10.0
libtpu: 0.0.40
codegen_flags: <defaults>
</compile_context>

<pallas_src>
import math
from functools import partial

import jax
import jax.numpy as jnp
from jax import lax
from jax.experimental import pallas as pl
from jax.experimental.pallas import tpu as pltpu


# ---------------------------------------------------------------------------
# Generation-aware VMEM / tiling helpers
# ---------------------------------------------------------------------------
def _vmem_capacity_bytes():
    """Physical VMEM of the current generation (128 MiB v5e/v6e, 64 MiB v7x)."""
    try:
        info = pltpu.get_tpu_info()
        cap = getattr(info, "vmem_capacity_bytes", None)
        if cap:
            return int(cap)
    except Exception:
        pass
    return 128 * 1024 * 1024


def _vmem_limit_bytes():
    # ~3/4 of physical, capped at 100 MiB: 96 MiB on v5e/v6e, 48 MiB on v7x,
    # leaving headroom for Mosaic internal scratch.
    return min(3 * _vmem_capacity_bytes() // 4, 100 * 1024 * 1024)


def _tile_targets():
    # v7x halves VMEM (64 MiB) -> smaller tiles keep double-buffering alive;
    # v5e/v6e (128 MiB) take larger tiles for higher K/V reuse per q tile.
    if _vmem_capacity_bytes() <= 64 * 1024 * 1024:
        return 256, 256
    return 512, 512


def _pick_tile(n, target):
    """Largest multiple-of-8 divisor of n that is <= target, else n itself."""
    if n <= target:
        return n
    start = target - (target % 8)
    for t in range(start, 7, -8):
        if n % t == 0:
            return t
    # TODO(synk): kv/q edge masking for sequence lengths with no suitable
    # multiple-of-8 divisor; fall back to a single full-S tile for now.
    return n


# ---------------------------------------------------------------------------
# Fused flash-attention + output-projection kernel
# ---------------------------------------------------------------------------
def _mha_kernel(q_ref, k_ref, v_ref, wt_ref, b_ref, o_ref,
                m_sc, l_sc, acc_sc, *, n_head, d_k, scale):
    """One (batch, q-tile) of multi-head attention, kv axis = grid axis 2.

    Blocks (natural (B, S, E) layout -- no wrapper transposes):
      q_ref  (1, tq, E)        k_ref/v_ref (1, tk, E)
      wt_ref (E, E)   w_o weight pre-transposed to (in, out)   [resident]
      b_ref  (1, E)   w_o bias                                  [resident]
      o_ref  (1, tq, E)  lane-dense block of the (B, S, E) result
    Scratch (persists across the kv grid axis):
      m_sc/l_sc (n_head, tq, 1) f32   online-softmax running max / denom
      acc_sc    (n_head, tq, d_k) f32 running P@V accumulator
    """
    ki = pl.program_id(2)
    last_ki = pl.num_programs(2) - 1

    @pl.when(ki == 0)
    def _init():
        m_sc[...] = jnp.full(m_sc.shape, -jnp.inf, dtype=m_sc.dtype)
        l_sc[...] = jnp.zeros(l_sc.shape, dtype=l_sc.dtype)
        acc_sc[...] = jnp.zeros(acc_sc.shape, dtype=acc_sc.dtype)

    # MXU operands stay in the input dtype (no f32 upcast); 1/sqrt(d_k) is
    # folded into q (tq*E elements) instead of each tq*tk score block.
    q = q_ref[0] * jnp.asarray(scale, dtype=q_ref.dtype)   # (tq, E)
    k = k_ref[0]                                            # (tk, E)
    v = v_ref[0]                                            # (tk, E)

    # Heads sit side-by-side on the lane axis; a trace-time-unrolled per-head
    # loop of plain 2-D matmuls keeps the Mosaic lowering simple and lets the
    # scheduler overlap independent heads.
    for h in range(n_head):
        lo = h * d_k
        qh = q[:, lo:lo + d_k]                               # (tq, d_k)
        kh = k[:, lo:lo + d_k]                               # (tk, d_k)
        vh = v[:, lo:lo + d_k]                               # (tk, d_k)

        # scores = qh @ kh^T: contract the shared minor dim, no explicit .T
        s = lax.dot_general(qh, kh,
                            dimension_numbers=(((1,), (1,)), ((), ())),
                            preferred_element_type=jnp.float32)   # (tq, tk)

        m_prev = m_sc[h]                                     # (tq, 1)
        m_new = jnp.maximum(m_prev, jnp.max(s, axis=-1, keepdims=True))
        alpha = jnp.exp(m_prev - m_new)
        p = jnp.exp(s - m_new)                               # f32 on the EUP

        l_sc[h] = alpha * l_sc[h] + jnp.sum(p, axis=-1, keepdims=True)
        pv = jnp.dot(p.astype(v_ref.dtype), vh,
                     preferred_element_type=jnp.float32)      # (tq, d_k)
        acc_sc[h] = alpha * acc_sc[h] + pv
        m_sc[h] = m_new

    @pl.when(ki == last_ki)
    def _finalize():
        # Exact normalization (once per q tile; approx reciprocal buys nothing
        # here), fused with the w_o projection:
        #   concat_h(acc_h / l_h) @ W^T + b
        #     == sum_h (acc_h / l_h) @ W_t[h*d_k:(h+1)*d_k, :] + b
        # so no head-concat relayout is needed and the (tq, E) store is
        # lane-dense.
        acc_y = None
        for h in range(n_head):
            lo = h * d_k
            xh = (acc_sc[h] / l_sc[h]).astype(wt_ref.dtype)   # (tq, d_k)
            yh = jnp.dot(xh, wt_ref[lo:lo + d_k, :],
                         preferred_element_type=jnp.float32)  # (tq, E)
            acc_y = yh if acc_y is None else acc_y + yh
        o_ref[0] = (acc_y + b_ref[...].astype(jnp.float32)).astype(o_ref.dtype)


# ---------------------------------------------------------------------------
# Module wrapper (mirrors MultiHeadAttention.forward)
# ---------------------------------------------------------------------------
@partial(jax.jit, static_argnames=("n_head",))
def multi_head_attention(q, k, v, w_o_weight, w_o_bias, n_head):
    B, S, E = q.shape
    assert E % n_head == 0
    d_k = E // n_head
    scale = 1.0 / math.sqrt(d_k)

    tq_t, tk_t = _tile_targets()
    tq = _pick_tile(S, tq_t)
    tk = _pick_tile(S, tk_t)

    # One-time (negligible) wrapper transpose so the in-kernel projection
    # contracts the weight in MXU-native orientation (no per-step transpose).
    w_t = w_o_weight.T                     # (E_in, E_out)
    b2 = w_o_bias.reshape(1, E)

    grid = (B, S // tq, S // tk)           # kv (reduction) axis last

    return pl.pallas_call(
        partial(_mha_kernel, n_head=n_head, d_k=d_k, scale=scale),
        out_shape=jax.ShapeDtypeStruct((B, S, E), q.dtype),
        grid=grid,
        in_specs=[
            pl.BlockSpec((1, tq, E), lambda b, qi, ki: (b, qi, 0)),
            pl.BlockSpec((1, tk, E), lambda b, qi, ki: (b, ki, 0)),
            pl.BlockSpec((1, tk, E), lambda b, qi, ki: (b, ki, 0)),
            pl.BlockSpec((E, E), lambda b, qi, ki: (0, 0)),     # resident weight
            pl.BlockSpec((1, E), lambda b, qi, ki: (0, 0)),     # resident bias
        ],
        out_specs=pl.BlockSpec((1, tq, E), lambda b, qi, ki: (b, qi, 0)),
        scratch_shapes=[
            pltpu.VMEM((n_head, tq, 1), jnp.float32),    # m: running row max
            pltpu.VMEM((n_head, tq, 1), jnp.float32),    # l: running denom
            pltpu.VMEM((n_head, tq, d_k), jnp.float32),  # acc: running P@V
        ],
        compiler_params=pltpu.CompilerParams(
            dimension_semantics=("parallel", "parallel", "arbitrary"),
            vmem_limit_bytes=_vmem_limit_bytes()),
    )(q, k, v, w_t, b2)


# ---------------------------------------------------------------------------
# Pure-JAX reference (mirrors the PyTorch module)
# ---------------------------------------------------------------------------
def _reference(q, k, v, w_o_weight, w_o_bias, n_head):
    B, S, E = q.shape
    d_k = E // n_head
    sh = lambda x: x.reshape(B, S, n_head, d_k).transpose(0, 2, 1, 3)
    qh, kh, vh = sh(q), sh(k), sh(v)
    scores = jnp.einsum("bhqd,bhkd->bhqk", qh, kh) / math.sqrt(d_k)
    p = jax.nn.softmax(scores, axis=-1)
    out = jnp.einsum("bhqk,bhkd->bhqd", p, vh)
    out = out.transpose(0, 2, 1, 3).reshape(B, S, E)
    return out @ w_o_weight.T + w_o_bias


if __name__ == "__main__":
    B, S, n_module, n_head = 2, 8, 32, 4
    key = jax.random.PRNGKey(0)
    kq, kk, kv, kw, kb = jax.random.split(key, 5)

    q = jax.random.normal(kq, (B, S, n_module), dtype=jnp.float32)
    k = jax.random.normal(kk, (B, S, n_module), dtype=jnp.float32)
    v = jax.random.normal(kv, (B, S, n_module), dtype=jnp.float32)

    # nn.Linear(n_module, n_module): weight (out, in), bias (out,)
    bound = 1.0 / math.sqrt(n_module)
    w_o_weight = jax.random.uniform(kw, (n_module, n_module), jnp.float32,
                                    minval=-bound, maxval=bound)
    w_o_bias = jax.random.uniform(kb, (n_module,), jnp.float32,
                                  minval=-bound, maxval=bound)

    out = multi_head_attention(q, k, v, w_o_weight, w_o_bias, n_head)
    out = jax.block_until_ready(out)

    ref = _reference(q, k, v, w_o_weight, w_o_bias, n_head)
    assert out.shape == (B, S, n_module)
    assert jnp.allclose(out, ref, atol=1e-3, rtol=1e-3), "mismatch vs reference"

    print("KERNEL_OK")
</pallas_src>

<mosaic_0001>
module attributes {stable_mosaic.version = 11 : i64} {
  func.func @_mha_kernel(%arg0: i32, %arg1: i32, %arg2: i32, %arg3: memref<1x8x32xf32, #tpu.memory_space<vmem>>, %arg4: memref<1x8x32xf32, #tpu.memory_space<vmem>>, %arg5: memref<1x8x32xf32, #tpu.memory_space<vmem>>, %arg6: memref<32x32xf32, #tpu.memory_space<vmem>>, %arg7: memref<1x32xf32, #tpu.memory_space<vmem>>, %arg8: memref<1x8x32xf32, #tpu.memory_space<vmem>>, %arg9: memref<4x8x1xf32, #tpu.memory_space<vmem>>, %arg10: memref<4x8x1xf32, #tpu.memory_space<vmem>>, %arg11: memref<4x8x8xf32, #tpu.memory_space<vmem>>) attributes {dimension_semantics = [#tpu.dimension_semantics<parallel>, #tpu.dimension_semantics<parallel>, #tpu.dimension_semantics<arbitrary>], iteration_bounds = array<i64: 2, 1, 1>, scalar_prefetch = 0 : i64, scratch_operands = 3 : i64, tpu.core_type = #tpu.core_type<tc>, window_params = [{transform_indices = @transform_0, window_bounds = array<i64: 1, 8, 32>}, {transform_indices = @transform_1, window_bounds = array<i64: 1, 8, 32>}, {transform_indices = @transform_2, window_bounds = array<i64: 1, 8, 32>}, {pipeline_mode = #tpu.pipeline_mode<synchronous>, transform_indices = @transform_3, window_bounds = array<i64: 32, 32>}, {pipeline_mode = #tpu.pipeline_mode<synchronous>, transform_indices = @transform_4, window_bounds = array<i64: 1, 32>}, {transform_indices = @transform_5, window_bounds = array<i64: 1, 8, 32>}]} {
    %c0_i32 = arith.constant 0 : i32
    %0 = arith.cmpi eq, %arg2, %c0_i32 : i32
    %1 = arith.extui %0 : i1 to i32
    %c0_i32_0 = arith.constant 0 : i32
    %2 = arith.cmpi ne, %1, %c0_i32_0 : i32
    scf.if %2 {
      %cst_96 = arith.constant 0xFF800000 : f32
      %154 = vector.broadcast %cst_96 : f32 to vector<4x8x1xf32>
      %c0_97 = arith.constant 0 : index
      %c0_98 = arith.constant 0 : index
      %c0_99 = arith.constant 0 : index
      %155 = vector.load %arg9[%c0_97, %c0_98, %c0_99] : memref<4x8x1xf32, #tpu.memory_space<vmem>>, vector<4x8x1xf32>
      tpu.vector_store %arg9[%c0_97, %c0_98, %c0_99], %154 {strides = array<i32>} : memref<4x8x1xf32, #tpu.memory_space<vmem>>, vector<4x8x1xf32>,
      %cst_100 = arith.constant 0.000000e+00 : f32
      %156 = vector.broadcast %cst_100 : f32 to vector<4x8x1xf32>
      %c0_101 = arith.constant 0 : index
      %c0_102 = arith.constant 0 : index
      %c0_103 = arith.constant 0 : index
      %157 = vector.load %arg10[%c0_101, %c0_102, %c0_103] : memref<4x8x1xf32, #tpu.memory_space<vmem>>, vector<4x8x1xf32>
      tpu.vector_store %arg10[%c0_101, %c0_102, %c0_103], %156 {strides = array<i32>} : memref<4x8x1xf32, #tpu.memory_space<vmem>>, vector<4x8x1xf32>,
      %cst_104 = arith.constant 0.000000e+00 : f32
      %158 = vector.broadcast %cst_104 : f32 to vector<4x8x8xf32>
      %c0_105 = arith.constant 0 : index
      %c0_106 = arith.constant 0 : index
      %c0_107 = arith.constant 0 : index
      %159 = vector.load %arg11[%c0_105, %c0_106, %c0_107] : memref<4x8x8xf32, #tpu.memory_space<vmem>>, vector<4x8x8xf32>
      tpu.vector_store %arg11[%c0_105, %c0_106, %c0_107], %158 {strides = array<i32>} : memref<4x8x8xf32, #tpu.memory_space<vmem>>, vector<4x8x8xf32>,
    } else {
    }
    %c0 = arith.constant 0 : index
    %c0_1 = arith.constant 0 : index
    %c0_2 = arith.constant 0 : index
    %3 = vector.load %arg3[%c0, %c0_1, %c0_2] : memref<1x8x32xf32, #tpu.memory_space<vmem>>, vector<1x8x32xf32>
    %4 = vector.shape_cast %3 : vector<1x8x32xf32> to vector<8x32xf32>
    %cst = arith.constant 0.353553385 : f32
    %5 = vector.broadcast %cst : f32 to vector<8x32xf32>
    %6 = arith.mulf %4, %5 : vector<8x32xf32>
    %c0_3 = arith.constant 0 : index
    %c0_4 = arith.constant 0 : index
    %c0_5 = arith.constant 0 : index
    %7 = vector.load %arg4[%c0_3, %c0_4, %c0_5] : memref<1x8x32xf32, #tpu.memory_space<vmem>>, vector<1x8x32xf32>
    %8 = vector.shape_cast %7 : vector<1x8x32xf32> to vector<8x32xf32>
    %c0_6 = arith.constant 0 : index
    %c0_7 = arith.constant 0 : index
    %c0_8 = arith.constant 0 : index
    %9 = vector.load %arg5[%c0_6, %c0_7, %c0_8] : memref<1x8x32xf32, #tpu.memory_space<vmem>>, vector<1x8x32xf32>
    %10 = vector.shape_cast %9 : vector<1x8x32xf32> to vector<8x32xf32>
    %11 = vector.extract_strided_slice %6 {offsets = [0, 0], sizes = [8, 8], strides = [1, 1]} : vector<8x32xf32> to vector<8x8xf32>
    %12 = vector.extract_strided_slice %8 {offsets = [0, 0], sizes = [8, 8], strides = [1, 1]} : vector<8x32xf32> to vector<8x8xf32>
    %13 = vector.extract_strided_slice %10 {offsets = [0, 0], sizes = [8, 8], strides = [1, 1]} : vector<8x32xf32> to vector<8x8xf32>
    %cst_9 = arith.constant dense<0.000000e+00> : vector<8x8xf32>
    %14 = tpu.matmul %11, %12, %cst_9 {dimension_numbers = #tpu.dot_dimension_numbers<[1], [1], [0], [0], [0, 0, 1, 0], [], []>} : vector<8x8xf32>, vector<8x8xf32>, vector<8x8xf32> -> vector<8x8xf32>
    %c0_10 = arith.constant 0 : index
    %c0_11 = arith.constant 0 : index
    %c0_12 = arith.constant 0 : index
    %15 = vector.load %arg9[%c0_10, %c0_11, %c0_12] : memref<4x8x1xf32, #tpu.memory_space<vmem>>, vector<1x8x1xf32>
    %16 = vector.shape_cast %15 : vector<1x8x1xf32> to vector<8x1xf32>
    %cst_13 = arith.constant dense<0xFF800000> : vector<8xf32>
    %17 = vector.multi_reduction <maximumf>, %14, %cst_13 [1] : vector<8x8xf32> to vector<8xf32>
    %18 = vector.shape_cast %17 : vector<8xf32> to vector<8x1xf32>
    %19 = arith.maximumf %16, %18 : vector<8x1xf32>
    %20 = arith.subf %16, %19 : vector<8x1xf32>
    %21 = math.exp %20 : vector<8x1xf32>
    %22 = vector.broadcast %19 : vector<8x1xf32> to vector<8x8xf32>
    %23 = arith.subf %14, %22 : vector<8x8xf32>
    %24 = math.exp %23 : vector<8x8xf32>
    %c0_14 = arith.constant 0 : index
    %c0_15 = arith.constant 0 : index
    %c0_16 = arith.constant 0 : index
    %25 = vector.load %arg10[%c0_14, %c0_15, %c0_16] : memref<4x8x1xf32, #tpu.memory_space<vmem>>, vector<1x8x1xf32>
    %26 = vector.shape_cast %25 : vector<1x8x1xf32> to vector<8x1xf32>
    %27 = arith.mulf %21, %26 : vector<8x1xf32>
    %cst_17 = arith.constant dense<0.000000e+00> : vector<8xf32>
    %28 = vector.multi_reduction <add>, %24, %cst_17 [1] : vector<8x8xf32> to vector<8xf32>
    %29 = vector.shape_cast %28 : vector<8xf32> to vector<8x1xf32>
    %30 = arith.addf %27, %29 : vector<8x1xf32>
    %c0_18 = arith.constant 0 : index
    %c0_19 = arith.constant 0 : index
    %c0_20 = arith.constant 0 : index
    %31 = vector.load %arg10[%c0_18, %c0_19, %c0_20] : memref<4x8x1xf32, #tpu.memory_space<vmem>>, vector<1x8x1xf32>
    %32 = vector.shape_cast %31 : vector<1x8x1xf32> to vector<8x1xf32>
    %33 = vector.shape_cast %30 : vector<8x1xf32> to vector<1x8x1xf32>
    tpu.vector_store %arg10[%c0_18, %c0_19, %c0_20], %33 {strides = array<i32>} : memref<4x8x1xf32, #tpu.memory_space<vmem>>, vector<1x8x1xf32>,
    %cst_21 = arith.constant dense<0.000000e+00> : vector<8x8xf32>
    %34 = tpu.matmul %24, %13, %cst_21 {dimension_numbers = #tpu.dot_dimension_numbers<[1], [0], [0], [1], [0, 0, 1, 1], [], []>} : vector<8x8xf32>, vector<8x8xf32>, vector<8x8xf32> -> vector<8x8xf32>
    %c0_22 = arith.constant 0 : index
    %c0_23 = arith.constant 0 : index
    %c0_24 = arith.constant 0 : index
    %35 = vector.load %arg11[%c0_22, %c0_23, %c0_24] : memref<4x8x8xf32, #tpu.memory_space<vmem>>, vector<1x8x8xf32>
    %36 = vector.shape_cast %35 : vector<1x8x8xf32> to vector<8x8xf32>
    %37 = vector.broadcast %21 : vector<8x1xf32> to vector<8x8xf32>
    %38 = arith.mulf %37, %36 : vector<8x8xf32>
    %39 = arith.addf %38, %34 : vector<8x8xf32>
    %c0_25 = arith.constant 0 : index
    %c0_26 = arith.constant 0 : index
    %c0_27 = arith.constant 0 : index
    %40 = vector.load %arg11[%c0_25, %c0_26, %c0_27] : memref<4x8x8xf32, #tpu.memory_space<vmem>>, vector<1x8x8xf32>
    %41 = vector.shape_cast %40 : vector<1x8x8xf32> to vector<8x8xf32>
    %42 = vector.shape_cast %39 : vector<8x8xf32> to vector<1x8x8xf32>
    tpu.vector_store %arg11[%c0_25, %c0_26, %c0_27], %42 {strides = array<i32>} : memref<4x8x8xf32, #tpu.memory_space<vmem>>, vector<1x8x8xf32>,
    %c0_28 = arith.constant 0 : index
    %c0_29 = arith.constant 0 : index
    %c0_30 = arith.constant 0 : index
    %43 = vector.load %arg9[%c0_28, %c0_29, %c0_30] : memref<4x8x1xf32, #tpu.memory_space<vmem>>, vector<1x8x1xf32>
    %44 = vector.shape_cast %43 : vector<1x8x1xf32> to vector<8x1xf32>
    %45 = vector.shape_cast %19 : vector<8x1xf32> to vector<1x8x1xf32>
    tpu.vector_store %arg9[%c0_28, %c0_29, %c0_30], %45 {strides = array<i32>} : memref<4x8x1xf32, #tpu.memory_space<vmem>>, vector<1x8x1xf32>,
    %46 = vector.extract_strided_slice %6 {offsets = [0, 8], sizes = [8, 8], strides = [1, 1]} : vector<8x32xf32> to vector<8x8xf32>
    %47 = vector.extract_strided_slice %8 {offsets = [0, 8], sizes = [8, 8], strides = [1, 1]} : vector<8x32xf32> to vector<8x8xf32>
    %48 = vector.extract_strided_slice %10 {offsets = [0, 8], sizes = [8, 8], strides = [1, 1]} : vector<8x32xf32> to vector<8x8xf32>
    %cst_31 = arith.constant dense<0.000000e+00> : vector<8x8xf32>
    %49 = tpu.matmul %46, %47, %cst_31 {dimension_numbers = #tpu.dot_dimension_numbers<[1], [1], [0], [0], [0, 0, 1, 0], [], []>} : vector<8x8xf32>, vector<8x8xf32>, vector<8x8xf32> -> vector<8x8xf32>
    %c1 = arith.constant 1 : index
    %c0_32 = arith.constant 0 : index
    %c0_33 = arith.constant 0 : index
    %50 = vector.load %arg9[%c1, %c0_32, %c0_33] : memref<4x8x1xf32, #tpu.memory_space<vmem>>, vector<1x8x1xf32>
    %51 = vector.shape_cast %50 : vector<1x8x1xf32> to vector<8x1xf32>
    %cst_34 = arith.constant dense<0xFF800000> : vector<8xf32>
    %52 = vector.multi_reduction <maximumf>, %49, %cst_34 [1] : vector<8x8xf32> to vector<8xf32>
    %53 = vector.shape_cast %52 : vector<8xf32> to vector<8x1xf32>
    %54 = arith.maximumf %51, %53 : vector<8x1xf32>
    %55 = arith.subf %51, %54 : vector<8x1xf32>
    %56 = math.exp %55 : vector<8x1xf32>
    %57 = vector.broadcast %54 : vector<8x1xf32> to vector<8x8xf32>
    %58 = arith.subf %49, %57 : vector<8x8xf32>
    %59 = math.exp %58 : vector<8x8xf32>
    %c1_35 = arith.constant 1 : index
    %c0_36 = arith.constant 0 : index
    %c0_37 = arith.constant 0 : index
    %60 = vector.load %arg10[%c1_35, %c0_36, %c0_37] : memref<4x8x1xf32, #tpu.memory_space<vmem>>, vector<1x8x1xf32>
    %61 = vector.shape_cast %60 : vector<1x8x1xf32> to vector<8x1xf32>
    %62 = arith.mulf %56, %61 : vector<8x1xf32>
    %cst_38 = arith.constant dense<0.000000e+00> : vector<8xf32>
    %63 = vector.multi_reduction <add>, %59, %cst_38 [1] : vector<8x8xf32> to vector<8xf32>
    %64 = vector.shape_cast %63 : vector<8xf32> to vector<8x1xf32>
    %65 = arith.addf %62, %64 : vector<8x1xf32>
    %c1_39 = arith.constant 1 : index
    %c0_40 = arith.constant 0 : index
    %c0_41 = arith.constant 0 : index
    %66 = vector.load %arg10[%c1_39, %c0_40, %c0_41] : memref<4x8x1xf32, #tpu.memory_space<vmem>>, vector<1x8x1xf32>
    %67 = vector.shape_cast %66 : vector<1x8x1xf32> to vector<8x1xf32>
    %68 = vector.shape_cast %65 : vector<8x1xf32> to vector<1x8x1xf32>
    tpu.vector_store %arg10[%c1_39, %c0_40, %c0_41], %68 {strides = array<i32>} : memref<4x8x1xf32, #tpu.memory_space<vmem>>, vector<1x8x1xf32>,
    %cst_42 = arith.constant dense<0.000000e+00> : vector<8x8xf32>
    %69 = tpu.matmul %59, %48, %cst_42 {dimension_numbers = #tpu.dot_dimension_numbers<[1], [0], [0], [1], [0, 0, 1, 1], [], []>} : vector<8x8xf32>, vector<8x8xf32>, vector<8x8xf32> -> vector<8x8xf32>
    %c1_43 = arith.constant 1 : index
    %c0_44 = arith.constant 0 : index
    %c0_45 = arith.constant 0 : index
    %70 = vector.load %arg11[%c1_43, %c0_44, %c0_45] : memref<4x8x8xf32, #tpu.memory_space<vmem>>, vector<1x8x8xf32>
    %71 = vector.shape_cast %70 : vector<1x8x8xf32> to vector<8x8xf32>
    %72 = vector.broadcast %56 : vector<8x1xf32> to vector<8x8xf32>
    %73 = arith.mulf %72, %71 : vector<8x8xf32>
    %74 = arith.addf %73, %69 : vector<8x8xf32>
    %c1_46 = arith.constant 1 : index
    %c0_47 = arith.constant 0 : index
    %c0_48 = arith.constant 0 : index
    %75 = vector.load %arg11[%c1_46, %c0_47, %c0_48] : memref<4x8x8xf32, #tpu.memory_space<vmem>>, vector<1x8x8xf32>
    %76 = vector.shape_cast %75 : vector<1x8x8xf32> to vector<8x8xf32>
    %77 = vector.shape_cast %74 : vector<8x8xf32> to vector<1x8x8xf32>
    tpu.vector_store %arg11[%c1_46, %c0_47, %c0_48], %77 {strides = array<i32>} : memref<4x8x8xf32, #tpu.memory_space<vmem>>, vector<1x8x8xf32>,
    %c1_49 = arith.constant 1 : index
    %c0_50 = arith.constant 0 : index
    %c0_51 = arith.constant 0 : index
    %78 = vector.load %arg9[%c1_49, %c0_50, %c0_51] : memref<4x8x1xf32, #tpu.memory_space<vmem>>, vector<1x8x1xf32>
    %79 = vector.shape_cast %78 : vector<1x8x1xf32> to vector<8x1xf32>
    %80 = vector.shape_cast %54 : vector<8x1xf32> to vector<1x8x1xf32>
    tpu.vector_store %arg9[%c1_49, %c0_50, %c0_51], %80 {strides = array<i32>} : memref<4x8x1xf32, #tpu.memory_space<vmem>>, vector<1x8x1xf32>,
    %81 = vector.extract_strided_slice %6 {offsets = [0, 16], sizes = [8, 8], strides = [1, 1]} : vector<8x32xf32> to vector<8x8xf32>
    %82 = vector.extract_strided_slice %8 {offsets = [0, 16], sizes = [8, 8], strides = [1, 1]} : vector<8x32xf32> to vector<8x8xf32>
    %83 = vector.extract_strided_slice %10 {offsets = [0, 16], sizes = [8, 8], strides = [1, 1]} : vector<8x32xf32> to vector<8x8xf32>
    %cst_52 = arith.constant dense<0.000000e+00> : vector<8x8xf32>
    %84 = tpu.matmul %81, %82, %cst_52 {dimension_numbers = #tpu.dot_dimension_numbers<[1], [1], [0], [0], [0, 0, 1, 0], [], []>} : vector<8x8xf32>, vector<8x8xf32>, vector<8x8xf32> -> vector<8x8xf32>
    %c2 = arith.constant 2 : index
    %c0_53 = arith.constant 0 : index
    %c0_54 = arith.constant 0 : index
    %85 = vector.load %arg9[%c2, %c0_53, %c0_54] : memref<4x8x1xf32, #tpu.memory_space<vmem>>, vector<1x8x1xf32>
    %86 = vector.shape_cast %85 : vector<1x8x1xf32> to vector<8x1xf32>
    %cst_55 = arith.constant dense<0xFF800000> : vector<8xf32>
    %87 = vector.multi_reduction <maximumf>, %84, %cst_55 [1] : vector<8x8xf32> to vector<8xf32>
    %88 = vector.shape_cast %87 : vector<8xf32> to vector<8x1xf32>
    %89 = arith.maximumf %86, %88 : vector<8x1xf32>
    %90 = arith.subf %86, %89 : vector<8x1xf32>
    %91 = math.exp %90 : vector<8x1xf32>
    %92 = vector.broadcast %89 : vector<8x1xf32> to vector<8x8xf32>
    %93 = arith.subf %84, %92 : vector<8x8xf32>
    %94 = math.exp %93 : vector<8x8xf32>
    %c2_56 = arith.constant 2 : index
    %c0_57 = arith.constant 0 : index
    %c0_58 = arith.constant 0 : index
    %95 = vector.load %arg10[%c2_56, %c0_57, %c0_58] : memref<4x8x1xf32, #tpu.memory_space<vmem>>, vector<1x8x1xf32>
    %96 = vector.shape_cast %95 : vector<1x8x1xf32> to vector<8x1xf32>
    %97 = arith.mulf %91, %96 : vector<8x1xf32>
    %cst_59 = arith.constant dense<0.000000e+00> : vector<8xf32>
    %98 = vector.multi_reduction <add>, %94, %cst_59 [1] : vector<8x8xf32> to vector<8xf32>
    %99 = vector.shape_cast %98 : vector<8xf32> to vector<8x1xf32>
    %100 = arith.addf %97, %99 : vector<8x1xf32>
    %c2_60 = arith.constant 2 : index
    %c0_61 = arith.constant 0 : index
    %c0_62 = arith.constant 0 : index
    %101 = vector.load %arg10[%c2_60, %c0_61, %c0_62] : memref<4x8x1xf32, #tpu.memory_space<vmem>>, vector<1x8x1xf32>
    %102 = vector.shape_cast %101 : vector<1x8x1xf32> to vector<8x1xf32>
    %103 = vector.shape_cast %100 : vector<8x1xf32> to vector<1x8x1xf32>
    tpu.vector_store %arg10[%c2_60, %c0_61, %c0_62], %103 {strides = array<i32>} : memref<4x8x1xf32, #tpu.memory_space<vmem>>, vector<1x8x1xf32>,
    %cst_63 = arith.constant dense<0.000000e+00> : vector<8x8xf32>
    %104 = tpu.matmul %94, %83, %cst_63 {dimension_numbers = #tpu.dot_dimension_numbers<[1], [0], [0], [1], [0, 0, 1, 1], [], []>} : vector<8x8xf32>, vector<8x8xf32>, vector<8x8xf32> -> vector<8x8xf32>
    %c2_64 = arith.constant 2 : index
    %c0_65 = arith.constant 0 : index
    %c0_66 = arith.constant 0 : index
    %105 = vector.load %arg11[%c2_64, %c0_65, %c0_66] : memref<4x8x8xf32, #tpu.memory_space<vmem>>, vector<1x8x8xf32>
    %106 = vector.shape_cast %105 : vector<1x8x8xf32> to vector<8x8xf32>
    %107 = vector.broadcast %91 : vector<8x1xf32> to vector<8x8xf32>
    %108 = arith.mulf %107, %106 : vector<8x8xf32>
    %109 = arith.addf %108, %104 : vector<8x8xf32>
    %c2_67 = arith.constant 2 : index
    %c0_68 = arith.constant 0 : index
    %c0_69 = arith.constant 0 : index
    %110 = vector.load %arg11[%c2_67, %c0_68, %c0_69] : memref<4x8x8xf32, #tpu.memory_space<vmem>>, vector<1x8x8xf32>
    %111 = vector.shape_cast %110 : vector<1x8x8xf32> to vector<8x8xf32>
    %112 = vector.shape_cast %109 : vector<8x8xf32> to vector<1x8x8xf32>
    tpu.vector_store %arg11[%c2_67, %c0_68, %c0_69], %112 {strides = array<i32>} : memref<4x8x8xf32, #tpu.memory_space<vmem>>, vector<1x8x8xf32>,
    %c2_70 = arith.constant 2 : index
    %c0_71 = arith.constant 0 : index
    %c0_72 = arith.constant 0 : index
    %113 = vector.load %arg9[%c2_70, %c0_71, %c0_72] : memref<4x8x1xf32, #tpu.memory_space<vmem>>, vector<1x8x1xf32>
    %114 = vector.shape_cast %113 : vector<1x8x1xf32> to vector<8x1xf32>
    %115 = vector.shape_cast %89 : vector<8x1xf32> to vector<1x8x1xf32>
    tpu.vector_store %arg9[%c2_70, %c0_71, %c0_72], %115 {strides = array<i32>} : memref<4x8x1xf32, #tpu.memory_space<vmem>>, vector<1x8x1xf32>,
    %116 = vector.extract_strided_slice %6 {offsets = [0, 24], sizes = [8, 8], strides = [1, 1]} : vector<8x32xf32> to vector<8x8xf32>
    %117 = vector.extract_strided_slice %8 {offsets = [0, 24], sizes = [8, 8], strides = [1, 1]} : vector<8x32xf32> to vector<8x8xf32>
    %118 = vector.extract_strided_slice %10 {offsets = [0, 24], sizes = [8, 8], strides = [1, 1]} : vector<8x32xf32> to vector<8x8xf32>
    %cst_73 = arith.constant dense<0.000000e+00> : vector<8x8xf32>
    %119 = tpu.matmul %116, %117, %cst_73 {dimension_numbers = #tpu.dot_dimension_numbers<[1], [1], [0], [0], [0, 0, 1, 0], [], []>} : vector<8x8xf32>, vector<8x8xf32>, vector<8x8xf32> -> vector<8x8xf32>
    %c3 = arith.constant 3 : index
    %c0_74 = arith.constant 0 : index
    %c0_75 = arith.constant 0 : index
    %120 = vector.load %arg9[%c3, %c0_74, %c0_75] : memref<4x8x1xf32, #tpu.memory_space<vmem>>, vector<1x8x1xf32>
    %121 = vector.shape_cast %120 : vector<1x8x1xf32> to vector<8x1xf32>
    %cst_76 = arith.constant dense<0xFF800000> : vector<8xf32>
    %122 = vector.multi_reduction <maximumf>, %119, %cst_76 [1] : vector<8x8xf32> to vector<8xf32>
    %123 = vector.shape_cast %122 : vector<8xf32> to vector<8x1xf32>
    %124 = arith.maximumf %121, %123 : vector<8x1xf32>
    %125 = arith.subf %121, %124 : vector<8x1xf32>
    %126 = math.exp %125 : vector<8x1xf32>
    %127 = vector.broadcast %124 : vector<8x1xf32> to vector<8x8xf32>
    %128 = arith.subf %119, %127 : vector<8x8xf32>
    %129 = math.exp %128 : vector<8x8xf32>
    %c3_77 = arith.constant 3 : index
    %c0_78 = arith.constant 0 : index
    %c0_79 = arith.constant 0 : index
    %130 = vector.load %arg10[%c3_77, %c0_78, %c0_79] : memref<4x8x1xf32, #tpu.memory_space<vmem>>, vector<1x8x1xf32>
    %131 = vector.shape_cast %130 : vector<1x8x1xf32> to vector<8x1xf32>
    %132 = arith.mulf %126, %131 : vector<8x1xf32>
    %cst_80 = arith.constant dense<0.000000e+00> : vector<8xf32>
    %133 = vector.multi_reduction <add>, %129, %cst_80 [1] : vector<8x8xf32> to vector<8xf32>
    %134 = vector.shape_cast %133 : vector<8xf32> to vector<8x1xf32>
    %135 = arith.addf %132, %134 : vector<8x1xf32>
    %c3_81 = arith.constant 3 : index
    %c0_82 = arith.constant 0 : index
    %c0_83 = arith.constant 0 : index
    %136 = vector.load %arg10[%c3_81, %c0_82, %c0_83] : memref<4x8x1xf32, #tpu.memory_space<vmem>>, vector<1x8x1xf32>
    %137 = vector.shape_cast %136 : vector<1x8x1xf32> to vector<8x1xf32>
    %138 = vector.shape_cast %135 : vector<8x1xf32> to vector<1x8x1xf32>
    tpu.vector_store %arg10[%c3_81, %c0_82, %c0_83], %138 {strides = array<i32>} : memref<4x8x1xf32, #tpu.memory_space<vmem>>, vector<1x8x1xf32>,
    %cst_84 = arith.constant dense<0.000000e+00> : vector<8x8xf32>
    %139 = tpu.matmul %129, %118, %cst_84 {dimension_numbers = #tpu.dot_dimension_numbers<[1], [0], [0], [1], [0, 0, 1, 1], [], []>} : vector<8x8xf32>, vector<8x8xf32>, vector<8x8xf32> -> vector<8x8xf32>
    %c3_85 = arith.constant 3 : index
    %c0_86 = arith.constant 0 : index
    %c0_87 = arith.constant 0 : index
    %140 = vector.load %arg11[%c3_85, %c0_86, %c0_87] : memref<4x8x8xf32, #tpu.memory_space<vmem>>, vector<1x8x8xf32>
    %141 = vector.shape_cast %140 : vector<1x8x8xf32> to vector<8x8xf32>
    %142 = vector.broadcast %126 : vector<8x1xf32> to vector<8x8xf32>
    %143 = arith.mulf %142, %141 : vector<8x8xf32>
    %144 = arith.addf %143, %139 : vector<8x8xf32>
    %c3_88 = arith.constant 3 : index
    %c0_89 = arith.constant 0 : index
    %c0_90 = arith.constant 0 : index
    %145 = vector.load %arg11[%c3_88, %c0_89, %c0_90] : memref<4x8x8xf32, #tpu.memory_space<vmem>>, vector<1x8x8xf32>
    %146 = vector.shape_cast %145 : vector<1x8x8xf32> to vector<8x8xf32>
    %147 = vector.shape_cast %144 : vector<8x8xf32> to vector<1x8x8xf32>
    tpu.vector_store %arg11[%c3_88, %c0_89, %c0_90], %147 {strides = array<i32>} : memref<4x8x8xf32, #tpu.memory_space<vmem>>, vector<1x8x8xf32>,
    %c3_91 = arith.constant 3 : index
    %c0_92 = arith.constant 0 : index
    %c0_93 = arith.constant 0 : index
    %148 = vector.load %arg9[%c3_91, %c0_92, %c0_93] : memref<4x8x1xf32, #tpu.memory_space<vmem>>, vector<1x8x1xf32>
    %149 = vector.shape_cast %148 : vector<1x8x1xf32> to vector<8x1xf32>
    %150 = vector.shape_cast %124 : vector<8x1xf32> to vector<1x8x1xf32>
    tpu.vector_store %arg9[%c3_91, %c0_92, %c0_93], %150 {strides = array<i32>} : memref<4x8x1xf32, #tpu.memory_space<vmem>>, vector<1x8x1xf32>,
    %c0_i32_94 = arith.constant 0 : i32
    %151 = arith.cmpi eq, %arg2, %c0_i32_94 : i32
    %152 = arith.extui %151 : i1 to i32
    %c0_i32_95 = arith.constant 0 : i32
    %153 = arith.cmpi ne, %152, %c0_i32_95 : i32
    scf.if %153 {
      %c0_96 = arith.constant 0 : index
      %c0_97 = arith.constant 0 : index
      %c0_98 = arith.constant 0 : index
      %154 = vector.load %arg11[%c0_96, %c0_97, %c0_98] : memref<4x8x8xf32, #tpu.memory_space<vmem>>, vector<1x8x8xf32>
      %155 = vector.shape_cast %154 : vector<1x8x8xf32> to vector<8x8xf32>
      %c0_99 = arith.constant 0 : index
      %c0_100 = arith.constant 0 : index
      %c0_101 = arith.constant 0 : index
      %156 = vector.load %arg10[%c0_99, %c0_100, %c0_101] : memref<4x8x1xf32, #tpu.memory_space<vmem>>, vector<1x8x1xf32>
      %157 = vector.shape_cast %156 : vector<1x8x1xf32> to vector<8x1xf32>
      %158 = vector.broadcast %157 : vector<8x1xf32> to vector<8x8xf32>
      %159 = arith.divf %155, %158 : vector<8x8xf32>
      %c0_102 = arith.constant 0 : index
      %c0_103 = arith.constant 0 : index
      %160 = vector.load %arg6[%c0_102, %c0_103] : memref<32x32xf32, #tpu.memory_space<vmem>>, vector<8x32xf32>
      %cst_104 = arith.constant dense<0.000000e+00> : vector<8x32xf32>
      %161 = tpu.matmul %159, %160, %cst_104 {dimension_numbers = #tpu.dot_dimension_numbers<[1], [0], [0], [1], [0, 0, 1, 1], [], []>} : vector<8x8xf32>, vector<8x32xf32>, vector<8x32xf32> -> vector<8x32xf32>
      %c1_105 = arith.constant 1 : index
      %c0_106 = arith.constant 0 : index
      %c0_107 = arith.constant 0 : index
      %162 = vector.load %arg11[%c1_105, %c0_106, %c0_107] : memref<4x8x8xf32, #tpu.memory_space<vmem>>, vector<1x8x8xf32>
      %163 = vector.shape_cast %162 : vector<1x8x8xf32> to vector<8x8xf32>
      %c1_108 = arith.constant 1 : index
      %c0_109 = arith.constant 0 : index
      %c0_110 = arith.constant 0 : index
      %164 = vector.load %arg10[%c1_108, %c0_109, %c0_110] : memref<4x8x1xf32, #tpu.memory_space<vmem>>, vector<1x8x1xf32>
      %165 = vector.shape_cast %164 : vector<1x8x1xf32> to vector<8x1xf32>
      %166 = vector.broadcast %165 : vector<8x1xf32> to vector<8x8xf32>
      %167 = arith.divf %163, %166 : vector<8x8xf32>
      %c8 = arith.constant 8 : index
      %c0_111 = arith.constant 0 : index
      %168 = vector.load %arg6[%c8, %c0_111] : memref<32x32xf32, #tpu.memory_space<vmem>>, vector<8x32xf32>
      %cst_112 = arith.constant dense<0.000000e+00> : vector<8x32xf32>
      %169 = tpu.matmul %167, %168, %cst_112 {dimension_numbers = #tpu.dot_dimension_numbers<[1], [0], [0], [1], [0, 0, 1, 1], [], []>} : vector<8x8xf32>, vector<8x32xf32>, vector<8x32xf32> -> vector<8x32xf32>
      %170 = arith.addf %161, %169 : vector<8x32xf32>
      %c2_113 = arith.constant 2 : index
      %c0_114 = arith.constant 0 : index
      %c0_115 = arith.constant 0 : index
      %171 = vector.load %arg11[%c2_113, %c0_114, %c0_115] : memref<4x8x8xf32, #tpu.memory_space<vmem>>, vector<1x8x8xf32>
      %172 = vector.shape_cast %171 : vector<1x8x8xf32> to vector<8x8xf32>
      %c2_116 = arith.constant 2 : index
      %c0_117 = arith.constant 0 : index
      %c0_118 = arith.constant 0 : index
      %173 = vector.load %arg10[%c2_116, %c0_117, %c0_118] : memref<4x8x1xf32, #tpu.memory_space<vmem>>, vector<1x8x1xf32>
      %174 = vector.shape_cast %173 : vector<1x8x1xf32> to vector<8x1xf32>
      %175 = vector.broadcast %174 : vector<8x1xf32> to vector<8x8xf32>
      %176 = arith.divf %172, %175 : vector<8x8xf32>
      %c16 = arith.constant 16 : index
      %c0_119 = arith.constant 0 : index
      %177 = vector.load %arg6[%c16, %c0_119] : memref<32x32xf32, #tpu.memory_space<vmem>>, vector<8x32xf32>
      %cst_120 = arith.constant dense<0.000000e+00> : vector<8x32xf32>
      %178 = tpu.matmul %176, %177, %cst_120 {dimension_numbers = #tpu.dot_dimension_numbers<[1], [0], [0], [1], [0, 0, 1, 1], [], []>} : vector<8x8xf32>, vector<8x32xf32>, vector<8x32xf32> -> vector<8x32xf32>
      %179 = arith.addf %170, %178 : vector<8x32xf32>
      %c3_121 = arith.constant 3 : index
      %c0_122 = arith.constant 0 : index
      %c0_123 = arith.constant 0 : index
      %180 = vector.load %arg11[%c3_121, %c0_122, %c0_123] : memref<4x8x8xf32, #tpu.memory_space<vmem>>, vector<1x8x8xf32>
      %181 = vector.shape_cast %180 : vector<1x8x8xf32> to vector<8x8xf32>
      %c3_124 = arith.constant 3 : index
      %c0_125 = arith.constant 0 : index
      %c0_126 = arith.constant 0 : index
      %182 = vector.load %arg10[%c3_124, %c0_125, %c0_126] : memref<4x8x1xf32, #tpu.memory_space<vmem>>, vector<1x8x1xf32>
      %183 = vector.shape_cast %182 : vector<1x8x1xf32> to vector<8x1xf32>
      %184 = vector.broadcast %183 : vector<8x1xf32> to vector<8x8xf32>
      %185 = arith.divf %181, %184 : vector<8x8xf32>
      %c24 = arith.constant 24 : index
      %c0_127 = arith.constant 0 : index
      %186 = vector.load %arg6[%c24, %c0_127] : memref<32x32xf32, #tpu.memory_space<vmem>>, vector<8x32xf32>
      %cst_128 = arith.constant dense<0.000000e+00> : vector<8x32xf32>
      %187 = tpu.matmul %185, %186, %cst_128 {dimension_numbers = #tpu.dot_dimension_numbers<[1], [0], [0], [1], [0, 0, 1, 1], [], []>} : vector<8x8xf32>, vector<8x32xf32>, vector<8x32xf32> -> vector<8x32xf32>
      %188 = arith.addf %179, %187 : vector<8x32xf32>
      %c0_129 = arith.constant 0 : index
      %c0_130 = arith.constant 0 : index
      %189 = vector.load %arg7[%c0_129, %c0_130] : memref<1x32xf32, #tpu.memory_space<vmem>>, vector<1x32xf32>
      %190 = vector.broadcast %189 : vector<1x32xf32> to vector<8x32xf32>
      %191 = arith.addf %188, %190 : vector<8x32xf32>
      %c0_131 = arith.constant 0 : index
      %c0_132 = arith.constant 0 : index
      %c0_133 = arith.constant 0 : index
      %192 = vector.load %arg8[%c0_131, %c0_132, %c0_133] : memref<1x8x32xf32, #tpu.memory_space<vmem>>, vector<1x8x32xf32>
      %193 = vector.shape_cast %192 : vector<1x8x32xf32> to vector<8x32xf32>
      %194 = vector.shape_cast %191 : vector<8x32xf32> to vector<1x8x32xf32>
      tpu.vector_store %arg8[%c0_131, %c0_132, %c0_133], %194 {strides = array<i32>} : memref<1x8x32xf32, #tpu.memory_space<vmem>>, vector<1x8x32xf32>,
    } else {
    }
    return
  }
  func.func @transform_0(%arg0: i32, %arg1: i32, %arg2: i32) -> (i32, i32, i32) {
    %c0_i32 = arith.constant 0 : i32
    %c0_i32_0 = arith.constant 0 : i32
    return %arg0, %arg1, %c0_i32 : i32, i32, i32
  }
  func.func @transform_1(%arg0: i32, %arg1: i32, %arg2: i32) -> (i32, i32, i32) {
    %c0_i32 = arith.constant 0 : i32
    %c0_i32_0 = arith.constant 0 : i32
    return %arg0, %arg2, %c0_i32 : i32, i32, i32
  }
  func.func @transform_2(%arg0: i32, %arg1: i32, %arg2: i32) -> (i32, i32, i32) {
    %c0_i32 = arith.constant 0 : i32
    %c0_i32_0 = arith.constant 0 : i32
    return %arg0, %arg2, %c0_i32 : i32, i32, i32
  }
  func.func @transform_3(%arg0: i32, %arg1: i32, %arg2: i32) -> (i32, i32) {
    %c0_i32 = arith.constant 0 : i32
    %c0_i32_0 = arith.constant 0 : i32
    %c0_i32_1 = arith.constant 0 : i32
    return %c0_i32, %c0_i32_0 : i32, i32
  }
  func.func @transform_4(%arg0: i32, %arg1: i32, %arg2: i32) -> (i32, i32) {
    %c0_i32 = arith.constant 0 : i32
    %c0_i32_0 = arith.constant 0 : i32
    %c0_i32_1 = arith.constant 0 : i32
    return %c0_i32, %c0_i32_0 : i32, i32
  }
  func.func @transform_5(%arg0: i32, %arg1: i32, %arg2: i32) -> (i32, i32, i32) {
    %c0_i32 = arith.constant 0 : i32
    %c0_i32_0 = arith.constant 0 : i32
    return %arg0, %arg1, %c0_i32 : i32, i32, i32
  }
}

</mosaic_0001>

<bundles_post_ra>
// kernel: multi_head_attention.1
= control target key start
LH: loop header
LB: loop body
LE: loop exit
PB: predicated region body
PF: predicated region fallthrough
CT: control target
= control target key end

     0   :  { %s2646_s0 = inlined_call_operand.hbm [shape: f32[2,8,32], index: 0, kind: input, shape index: {}]   ;;  %s2647_s1 = inlined_call_operand.hbm [shape: f32[2,8,32], index: 1, kind: input, shape index: {}]   ;;  %s2648_s2 = inlined_call_operand.hbm [shape: f32[2,8,32], index: 2, kind: input, shape index: {}]   ;;  %s2649_s3 = inlined_call_operand.hbm [shape: f32[32,32], index: 3, kind: input, shape index: {}]   ;;  %s2650_s4 = inlined_call_operand.hbm [shape: f32[1,32], index: 4, kind: input, shape index: {}]   ;;  %s2651_s5 = inlined_call_operand.hbm [shape: f32[2,8,32], index: 5, kind: output, shape index: {}]  }
   0x1   :  { %2666 = sst [smem:[#allocation22_spill]] %s2647_s1 }
   0x2   :  { %2667 = sst [smem:[#allocation23_spill]] %s2649_s3 }
   0x3   :  { %2668 = sst [smem:[#allocation24_spill]] %s2650_s4 }
   0x4   :  { %10 = vsyncpa [#allocation6], 0 }
   0x5   :  { %12 = vsyncpa [#allocation6 + $0x1], 0 }
   0x6   :  { %13 = vsyncpa [#allocation9], 0 }
   0x7   :  { %15 = vsyncpa [#allocation9 + $0x1], 0 }
   0x8   :  { %16 = vsyncpa [#allocation12], 0 }
   0x9   :  { %17 = vsyncpa [#allocation7], 0 }
   0xa   :  { %19 = vsyncpa [#allocation7 + $0x1], 0  ;;  %s2189_s18 = smov 0   ;;  %s2191_s19 = smov 0  }
   0xb   :  { %s2193_s20 = smov 0   ;;  %s2195_s21 = smov 0  }
   0xc   :  { %s2197_s22 = smov 0   ;;  %s2199_s23 = smov 0  }
   0xd LB: > { %2669 = sst [smem:[#allocation19_spill]] %s2138_s22  ;;  %s2220_s24 = sadd.s32 4294967295, %s2142_s23   ;;  %s2142_s23 = sphi %s2199_s23, %s25_s23   ;;  %s2138_s22 = sphi %s2197_s22, %s2699_s22   ;;  %s2134_s21 = sphi %s2195_s21, %s2698_s21   ;;  %s2130_s20 = sphi %s2193_s20, %s2702_s20   ;;  %s2126_s19 = sphi %s2191_s19, %s2701_s19   ;;  %s2122_s18 = sphi %s2189_s18, %s2700_s18  }
   0xe   : > { %s1655_s25 = sadd.s32 4294967294, %s2142_s23   ;;  %p66_p0 = scmp.ne.s32.totalorder %s2126_s19, %s2122_s18 }
   0xf   : > { %p2652_p1 = scmp.eq.s32.totalorder %s2220_s24, 0  ;;  %p196_p3 = scmp.eq.s32.totalorder %s1655_s25, 1 }
  0x10   : > { %p1656_p5 = scmp.ge.s32.totalorder %s2142_s23, 1  ;;  %p203_p7 = scmp.lt.s32.totalorder %s2142_s23, 3 }
  0x11   : > { %p2229_p4 = por %p2652_p1, %p66_p0  ;;  %p2234_p6 = por %p196_p3, %p66_p0 }
  0x12   : > { %p2239_p8 = pnand %p1656_p5, %p203_p7  ;;  %s2144_s29 = smov [#allocation11]  }
  0x13   : > { %s2670_s26 = scalar_select %p2229_p4, 1, 0 }
  0x14   : > { %s2671_s27 = scalar_select %p2234_p6, 1, 0 }
  0x15   : > { %s2672_s28 = scalar_select %p2239_p8, 1, 0 }
  0x16   : > { %s215_s30 = sshll.u32 %s2144_s29, 4  ;;  %p1794_p9 = pneg %p2239_p8  ;;  %s216_s30 = int_to_ptr.vmem [resolvable:$true] %s215_s30 }
  0x17   : > { %s44_s7 = sadd.s32 1, %s2138_s22  ;;  %s2674_s3 = sld [smem:[#allocation23_spill]] }
  0x18   : > { %p2248_p11 = pnand %p1794_p9, %p2652_p1 }
  0x1a   : > { %s2673_s6 = scalar_select %p2248_p11, 1, 0 }
  0x1b   : > { %p2658_p13 = pneg %p2248_p11 }
  0x1d   : > { %s1906_s10 = scalar_lea.hbm %s2674_s3, 512 }
  0x1e   : > { %p1907_p12 = scmp.ne.s32.totalorder %s2674_s3, %s1906_s10  ;;  %p1913_p5 = scmp.lt.u32.totalorder %s1906_s10, %s2674_s3 }
  0x20   : > { %p1909_p0 = pnand %p2658_p13, %p1907_p12 }
  0x22   : > { %p1910_p3 = pneg %p1909_p0 }
  0x24   : > { %p1915_p7 = pnand %p1913_p5, %p1910_p3 }
  0x26   : > { %1918 = shalt.err (!%p1915_p7)
}
  0x27   : > { %s1919_s15 = scalar_lea.vmem %s216_s30, 512  ;;  %p1927_p2 = scmp.lt.s32.totalorder %s216_s30, %s216_s30 }
  0x28   : > { %p1920_p9 = scmp.ne.s32.totalorder %s216_s30, %s1919_s15  ;;  %p1928_p6 = scmp.lt.s32.totalorder %s1919_s15, %s1919_s15 }
  0x2a   : > { %p1922_p10 = pnand %p1920_p9, %p2658_p13  ;;  %p1929_p4 = por %p1928_p6, %p1927_p2 }
  0x2c   : > { %p1923_p1 = pneg %p1922_p10 }
  0x2e   : > { %p1930_p8 = pnand %p1929_p4, %p1923_p1 }
  0x30   : > { %1933 = shalt.err (!%p1930_p8)
}
  0x31   : > { %s2145_s16 = smov 128   ;;  %s2146_s17 = smov 8  }
  0x32   : > { %1797 = dma.hbm_to_vmem [thread:$0]  (!%p2248_p11), %s2674_s3, 512, %s216_s30, [#allocation12], %s2145_s16, %s2145_s16, %s2146_s17  }
  0x33   : > { %p46_p1 = scmp.ge.s32.totalorder %s44_s7, 2  ;;  %s53_s8 = sadd.s32 1, %s2130_s20 }
  0x34   : > { %p60_p2 = scmp.ne.s32.totalorder %s2130_s20, %s2126_s19  ;;  %p61_p4 = scmp.eq.s32.totalorder %s2142_s23, 0 }
  0x35   : > { %s2704_s7 = smov (%p46_p1, %s44_s7), 0  ;;  %p2676_p8 = scmp.eq.s32.totalorder %s2220_s24, 1 }
  0x36   : > { %2675 = sst [smem:[#allocation20_spill]] %s2704_s7  ;;  %p62_p6 = por %p61_p4, %p60_p2 }
  0x37   : > { %p2283_p10 = por %p2676_p8, %p60_p2  ;;  %s48_s10 = ssub.s32 %s2138_s22, %s2704_s7 }
  0x38   : > { %p1817_p12 = scmp.lt.s32.totalorder %s2142_s23, 2  ;;  %p51_p0 = scmp.eq.s32.totalorder %s48_s10, 0 }
  0x39   : > { %s2677_s9 = scalar_select %p2283_p10, 1, 0 }
  0x3a   : > { %s2655_s11 = sand.u32 1, %s2130_s20   ;;  %s2296_s12 = sshll.u32 %s2138_s22, 7 }
  0x3b   : > { %s2293_s30 = sshll.u32 %s2655_s11, 3  ;;  %p2301_p3 = pnand %p1817_p12, %p62_p6 }
  0x3c   : > { %s2299_s13 = scalar_select %p51_p0, %s2130_s20, %s53_s8  }
  0x3d   : > { %s2679_s14 = scalar_select %p2301_p3, 1, 0 }
  0x3e   : > { %2678 = sst [smem:[#allocation21_spill]] %s2299_s13  ;;  %s259_s15 = sand.u32 1, %s2142_s23  }
  0x3f   : > { %s2680_s1 = sld [smem:[#allocation22_spill]]  ;;  %s263_s29 = scalar_lea.vmem [#allocation8], %s2293_s30 }
  0x40   : > { %s271_s10 = sshll.u32 %s263_s29, 4  ;;  %s2147_s8 = smov [#allocation13]   ;;  %s2313_s10 = int_to_ptr.vmem [resolvable:$true] %s271_s10 }
  0x41   : > { %s2315_s11 = sshll.u32 %s2147_s8, 4  ;;  %s2317_s3 = scalar_lea.sflag [#allocation9], %s259_s15  ;;  %s230_s11 = int_to_ptr.vmem [resolvable:$true] %s2315_s11 }
  0x42   : > { %p2323_p7 = pneg %p2301_p3 }
  0x44   : > { %s2681_s16 = scalar_select %p2323_p7, 1, 0 }
  0x45   : > { %s2310_s25 = scalar_lea.hbm %s2680_s1, %s2296_s12  ;;  %s1939_s22 = scalar_lea.hbm %s2680_s1, 256 }
  0x46   : > { %s1934_s7 = scalar_lea.hbm %s2310_s25, 128  ;;  %p1940_p2 = scmp.lt.u32.totalorder %s2310_s25, %s2680_s1 }
  0x47   : > { %p1935_p5 = scmp.ne.s32.totalorder %s2310_s25, %s1934_s7  ;;  %p1941_p4 = scmp.lt.u32.totalorder %s1939_s22, %s1934_s7 }
  0x48   : > { %p1943_p8 = scmp.lt.u32.totalorder %s1934_s7, %s2310_s25 }
  0x49   : > { %p1937_p9 = pnand %p2323_p7, %p1935_p5  ;;  %p1942_p6 = por %p1941_p4, %p1940_p2 }
  0x4b   : > { %p1938_p1 = pneg %p1937_p9  ;;  %p1944_p12 = por %p1943_p8, %p1942_p6 }
  0x4d   : > { %p1945_p0 = pnand %p1944_p12, %p1938_p1 }
  0x4f   : > { %1948 = shalt.err (!%p1945_p0)
}
  0x50   : > { %s1949_s15 = scalar_lea.vmem %s2313_s10, 128  ;;  %s2148_s17 = smov [#allocation8]  }
  0x51   : > { %p1950_p5 = scmp.ne.s32.totalorder %s2313_s10, %s1949_s15  ;;  %s1954_s29 = sshll.u32 %s2148_s17, 4  ;;  %s1955_s29 = int_to_ptr.vmem [resolvable:$false] %s1954_s29 }
  0x52   : > { %s1956_s13 = scalar_lea.vmem %s1955_s29, 256  ;;  %p1957_p10 = scmp.lt.s32.totalorder %s2313_s10, %s1955_s29 }
  0x53   : > { %p1952_p9 = pnand %p1950_p5, %p2323_p7  ;;  %p1958_p11 = scmp.lt.s32.totalorder %s1956_s13, %s1949_s15 }
  0x55   : > { %p1953_p13 = pneg %p1952_p9  ;;  %p1959_p2 = por %p1958_p11, %p1957_p10 }
  0x57   : > { %p1960_p4 = pnand %p1959_p2, %p1953_p13 }
  0x59   : > { %1963 = shalt.err (!%p1960_p4)
}
  0x5a   : > { %1807 = dma.hbm_to_vmem [thread:$0]  (!%p2301_p3), %s2310_s25, 128, %s2313_s10, %s2317_s3  }
  0x5b   : > { %s2682_s4 = sld [smem:[#allocation24_spill]]  ;;  %p2683_p11 = scmp.ne.s32.totalorder %s2673_s6, 0 }
  0x5d   : > { %p2684_p13 = pneg %p2683_p11 }
  0x61   : > { %s1964_s8 = scalar_lea.hbm %s2682_s4, 16 }
  0x62   : > { %p1965_p1 = scmp.ne.s32.totalorder %s2682_s4, %s1964_s8  ;;  %p1971_p8 = scmp.lt.u32.totalorder %s1964_s8, %s2682_s4 }
  0x64   : > { %p1967_p10 = pnand %p1965_p1, %p2684_p13 }
  0x66   : > { %p1968_p6 = pneg %p1967_p10 }
  0x68   : > { %p1973_p12 = pnand %p1971_p8, %p1968_p6 }
  0x6a   : > { %1976 = shalt.err (!%p1973_p12)
}
  0x6b   : > { %s1977_s25 = scalar_lea.vmem %s230_s11, 16  ;;  %p2685_p5 = pmov %p2684_p13 }
  0x6c   : > { %p1978_p0 = scmp.ne.s32.totalorder %s230_s11, %s1977_s25  ;;  %s1984_s10 = scalar_lea.vmem %s230_s11, 32 }
  0x6d   : > { %p1985_p4 = scmp.lt.s32.totalorder %s230_s11, %s230_s11  ;;  %p1986_p3 = scmp.lt.s32.totalorder %s1984_s10, %s1977_s25 }
  0x6e   : > { %p1980_p9 = pnand %p1978_p0, %p2685_p5 }
  0x6f   : > { %p1987_p7 = por %p1986_p3, %p1985_p4 }
  0x70   : > { %p1981_p2 = pneg %p1980_p9 }
  0x72   : > { %p1988_p1 = pnand %p1987_p7, %p1981_p2 }
  0x74   : > { %1991 = shalt.err (!%p1988_p1)
}
  0x75   : > { %1800 = dma.hbm_to_vmem [thread:$0]  (!%p2683_p11), %s2682_s4, 16, %s230_s11, [#allocation12]  }
  0x76   : > { %s2372_s8 = scalar_lea.hbm %s2646_s0, %s2296_s12  ;;  %s244_s17 = scalar_lea.vmem [#allocation5], %s2293_s30 }
  0x77   : > { %s252_s6 = sshll.u32 %s244_s17, 4  ;;  %s2381_s25 = scalar_lea.hbm %s2648_s2, %s2296_s12  ;;  %s2375_s6 = int_to_ptr.vmem [resolvable:$true] %s252_s6 }
  0x78   : > { %s2686_s10 = sand.u32 1, %s2130_s20   ;;  %s1992_s1 = scalar_lea.hbm %s2372_s8, 128 }
  0x79   : > { %s241_s11 = scalar_lea.sflag [#allocation6], %s2686_s10  ;;  %p1993_p3 = scmp.ne.s32.totalorder %s2372_s8, %s1992_s1 }
  0x7a   : > { %p2687_p7 = scmp.ne.s32.totalorder %s2681_s16, 0  ;;  %s1997_s7 = scalar_lea.hbm %s2646_s0, 256 }
  0x7b   : > { %p1998_p10 = scmp.lt.u32.totalorder %s2372_s8, %s2646_s0  ;;  %p1999_p6 = scmp.lt.u32.totalorder %s1997_s7, %s1992_s1 }
  0x7c   : > { %p1995_p11 = pnand %p1993_p3, %p2687_p7  ;;  %p2001_p12 = scmp.lt.u32.totalorder %s1992_s1, %s2372_s8 }
  0x7d   : > { %p2000_p8 = por %p1999_p6, %p1998_p10 }
  0x7e   : > { %p1996_p13 = pneg %p1995_p11 }
  0x7f   : > { %p2002_p0 = por %p2001_p12, %p2000_p8 }
  0x81   : > { %p2003_p5 = pnand %p2002_p0, %p1996_p13 }
  0x83   : > { %2006 = shalt.err (!%p2003_p5)
}
  0x84   : > { %s2007_s12 = scalar_lea.vmem %s2375_s6, 128  ;;  %s2149_s15 = smov [#allocation5]  }
  0x85   : > { %p2008_p9 = scmp.ne.s32.totalorder %s2375_s6, %s2007_s12  ;;  %s2012_s29 = sshll.u32 %s2149_s15, 4  ;;  %s2013_s29 = int_to_ptr.vmem [resolvable:$false] %s2012_s29 }
  0x86   : > { %s2014_s4 = scalar_lea.vmem %s2013_s29, 256  ;;  %p2015_p1 = scmp.lt.s32.totalorder %s2375_s6, %s2013_s29 }
  0x87   : > { %p2010_p2 = pnand %p2008_p9, %p2687_p7  ;;  %p2016_p3 = scmp.lt.s32.totalorder %s2014_s4, %s2007_s12 }
  0x89   : > { %p2011_p4 = pneg %p2010_p2  ;;  %p2017_p11 = por %p2016_p3, %p2015_p1 }
  0x8b   : > { %p2018_p10 = pnand %p2017_p11, %p2011_p4 }
  0x8d   : > { %2021 = shalt.err (!%p2018_p10)
}
  0x8e   : > { %p2688_p13 = scmp.ne.s32.totalorder %s2679_s14, 0  ;;  %s282_s10 = scalar_lea.vmem [#allocation10], %s2293_s30 }
  0x8f   : > { %s290_s1 = sshll.u32 %s282_s10, 4  ;;  %s2022_s13 = scalar_lea.hbm %s2381_s25, 128  ;;  %s291_s1 = int_to_ptr.vmem [resolvable:$true] %s290_s1 }
  0x90   : > { %1804 = dma.hbm_to_vmem [thread:$0]  (!%p2688_p13), %s2372_s8, 128, %s2375_s6, %s241_s11  }
  0x91   : > { %p2023_p6 = scmp.ne.s32.totalorder %s2381_s25, %s2022_s13  ;;  %s2027_s17 = scalar_lea.hbm %s2648_s2, 256 }
  0x92   : > { %p2028_p0 = scmp.lt.u32.totalorder %s2381_s25, %s2648_s2  ;;  %p2029_p5 = scmp.lt.u32.totalorder %s2027_s17, %s2022_s13 }
  0x93   : > { %p2025_p8 = pnand %p2023_p6, %p2687_p7  ;;  %p2031_p2 = scmp.lt.u32.totalorder %s2022_s13, %s2381_s25 }
  0x94   : > { %p2030_p9 = por %p2029_p5, %p2028_p0 }
  0x95   : > { %p2026_p12 = pneg %p2025_p8 }
  0x96   : > { %p2032_p4 = por %p2031_p2, %p2030_p9 }
  0x98   : > { %p2033_p1 = pnand %p2032_p4, %p2026_p12 }
  0x9a   : > { %2036 = shalt.err (!%p2033_p1)
}
  0x9b   : > { %s2037_s30 = scalar_lea.vmem %s291_s1, 128  ;;  %s2150_s8 = smov [#allocation10]  }
  0x9c   : > { %p2038_p3 = scmp.ne.s32.totalorder %s291_s1, %s2037_s30  ;;  %s2042_s6 = sshll.u32 %s2150_s8, 4  ;;  %s2043_s6 = int_to_ptr.vmem [resolvable:$false] %s2042_s6 }
  0x9d   : > { %s2044_s11 = scalar_lea.vmem %s2043_s6, 256  ;;  %p2045_p6 = scmp.lt.s32.totalorder %s291_s1, %s2043_s6 }
  0x9e   : > { %p2040_p11 = pnand %p2038_p3, %p2687_p7  ;;  %p2046_p8 = scmp.lt.s32.totalorder %s2044_s11, %s2037_s30 }
  0xa0   : > { %p2041_p10 = pneg %p2040_p11  ;;  %p2047_p13 = por %p2046_p8, %p2045_p6 }
  0xa2   : > { %p2048_p0 = pnand %p2047_p13, %p2041_p10 }
  0xa4   : > { %2051 = shalt.err (!%p2048_p0)
}
  0xa5   : > { %p2689_p5 = scmp.ne.s32.totalorder %s2679_s14, 0  ;;  %p2690_p12 = scmp.ne.s32.totalorder %s2672_s28, 0 }
  0xa6   : > { %s2428_s16 = sand.u32 (!%p2690_p12), 1, %s2126_s19   ;;  %p2691_p7 = scmp.ne.s32.totalorder (!%p2690_p12), %s2670_s26, 0 }
  0xa7   : > { %1810 = dma.hbm_to_vmem [thread:$0]  (!%p2689_p5), %s2381_s25, 128, %s291_s1, %s2317_s3  }
  0xa8   : > { %299 = sbr.rel (%p2690_p12) target bundleno = 1725 (0x6bd), region = 40  ;;  %s2431_s29 = sshll.u32 (!%p2690_p12), %s2428_s16, 3 }
  0xa9   : > { %s302_s4 = scalar_lea.sflag (!%p2690_p12), [#allocation6], %s2428_s16  ;;  %s305_s10 = scalar_lea.vmem (!%p2690_p12), [#allocation5], %s2431_s29 }
  0xaf   : > { %2105 = dma.done.wait (%p2691_p7), %s302_s4, 128  }
  0xb0   : > { %2107 = vsyncadd (%p2691_p7), %s302_s4, 4294967168  ;;  %s310_s3 = sand.u32 1, %s2220_s24   ;;  %s314_s14 = scalar_lea.vmem [#allocation8], %s2431_s29 }
  0xb1   : > { %s311_s28 = scalar_lea.sflag [#allocation9], %s310_s3 }
  0xb2   : > { %2109 = dma.done.wait (%p2691_p7), %s311_s28, 256  }
  0xb3   : > { %2111 = vsyncadd (%p2691_p7), %s311_s28, 4294967040  ;;  %s323_s25 = scalar_lea.vmem [#allocation10], %s2431_s29  ;;  %p2692_p13 = scmp.eq.s32.totalorder %s2220_s24, 0 }
  0xb5   : > { %2113 = dma.done.wait (%p2692_p13), [#allocation12], 528   ;;  %p2693_p9 = pmov %p2692_p13 }
  0xb6   : > { %vm381_vm0 = vcmask 64512   ;;  %v2151_v0 = vmov 0.0   ;;  %vm2152_vm1 = vmmov 0   ;;  %v388_v1 = vld [vmem:[%s314_s14] sm:$0xff]  ;;  %v386_v2 = vld [vmem:[%s305_s10] sm:$0xff]  ;;  %vm372_vm2 = vcmask 7168  }
  0xb7   : > { %2115 = vsyncadd (%p2693_p9), [#allocation12], 4294966768  ;;  %1718 = vmatprep.subr.mxu0 %v2151_v0  ;;  %382 = vst.msk [vmem:[#allocation4] sm:$0xff] %vm381_vm0, %v2151_v0  ;;  %1720 = vmatprep.mubr.msk.f32.mxu0 %vm2152_vm1, %v2151_v0  ;;  %v387_v3 = vmul.f32 0.35355338, %v386_v2  ;;  %v2153_v4 = vmov -inf  }
  0xb8   : > { %383 = vst.msk [vmem:[#allocation4 + $0x8] sm:$0xff] %vm381_vm0, %v2151_v0  ;;  %384 = vst.msk [vmem:[#allocation4 + $0x10] sm:$0xff] %vm381_vm0, %v2151_v0  ;;  %1723 = vmatprep.subr.mxu1 %v2151_v0  ;;  %1725 = vmatprep.mubr.msk.f32.mxu1 %vm2152_vm1, %v2151_v0  ;;  %v2154_v8 = vmov 0   ;;  %s2155_s24 = smov 120   ;;  %s2156_s26 = smov 112   ;;  %v389_v13 = vld [vmem:[%s323_s25] sm:$0xff] }
  0xb9   : > { %385 = vst.msk [vmem:[#allocation4 + $0x18] sm:$0xff] %vm381_vm0, %v2151_v0  ;;  %1719 = vmatpush3.xpose.msk.msra.mxu0 %vm381_vm0, %v388_v1  ;;  %1880 = vset.pattern.permute.xlu0 %v2154_v8  ;;  %s2157_s1 = smov 104   ;;  %s1691_s13 = sshll.u32 %s2134_s21, 7  ;;  %vm1490_vm3 = vcmask 261120  }
  0xba   : > { %1733 = vmatprep.subr.mxu0 %v2151_v0  ;;  %373 = vst.msk [vmem:[#allocation2] sm:$0xff] %vm372_vm2, %v2153_v4  ;;  %374 = vst.msk [vmem:[#allocation2 + $0x8] sm:$0xff] %vm372_vm2, %v2153_v4  ;;  %1881 = vset.pattern.permute.xlu1 %v2154_v8  ;;  %s367_s22 = scalar_lea.vmem [#allocation14], %s2431_s29  ;;  %s2597_s15 = scalar_lea.hbm %s2651_s5, %s1691_s13 }
  0xbb   : > { %375 = vst.msk [vmem:[#allocation2 + $0x10] sm:$0xff] %vm372_vm2, %v2153_v4  ;;  %376 = vst.msk [vmem:[#allocation2 + $0x18] sm:$0xff] %vm372_vm2, %v2153_v4  ;;  %576 = vrot.lane.b32.xlu1 %v388_v1, %s2155_s24  ;;  %1724 = vmatpush3.msra.mxu1 %v389_v13  ;;  %s1507_s7 = sshll.u32 %s367_s22, 4  ;;  %s1493_s30 = scalar_lea.sflag [#allocation7], %s2428_s16  ;;  %s2599_s7 = int_to_ptr.vmem [resolvable:$true] %s1507_s7 }
  0xbc   : > { %1721 = vmatmul.mubr.msk.f32.vlgmr.msra.gmra.mrb[0].mxu0 %vm381_vm0, %v387_v3  ;;  %377 = vst.msk [vmem:[#allocation3] sm:$0xff] %vm372_vm2, %v2151_v0  ;;  %378 = vst.msk [vmem:[#allocation3 + $0x8] sm:$0xff] %vm372_vm2, %v2151_v0  ;;  %1728 = vmatprep.subr.mxu1 %v2151_v0  ;;  %s2052_s8 = scalar_lea.vmem %s2599_s7, 128  ;;  %p2694_p4 = scmp.ne.s32.totalorder %s2677_s9, 0 }
  0xbd   : > { %1735 = vmatprep.mubr.msk.f32.mxu0 %vm2152_vm1, %v2151_v0  ;;  %379 = vst.msk [vmem:[#allocation3 + $0x10] sm:$0xff] %vm372_vm2, %v2151_v0  ;;  %380 = vst.msk [vmem:[#allocation3 + $0x18] sm:$0xff] %vm372_vm2, %v2151_v0  ;;  %p2053_p2 = scmp.ne.s32.totalorder %s2599_s7, %s2052_s8  ;;  %s2158_s21 = smov [#allocation14]  }
  0xbe   : > { %s2056_s6 = sshll.u32 %s2158_s21, 4  ;;  %s2057_s6 = int_to_ptr.vmem [resolvable:$false] %s2056_s6 }
  0xbf   : > { %574 = vrot.lane.b32.xlu1 %v387_v3, %s2155_s24  ;;  %p2054_p1 = pnand %p2053_p2, %p2694_p4  ;;  %s2058_s11 = scalar_lea.vmem %s2057_s6, 256 }
  0xc0   : > { %p2059_p11 = scmp.lt.s32.totalorder %s2599_s7, %s2057_s6  ;;  %p2060_p10 = scmp.lt.s32.totalorder %s2058_s11, %s2052_s8 }
  0xc1   : > { %v2488_v9 = vld [vmem:[#allocation2] sm:$0xff]  ;;  %v653_v35 = vld [vmem:[#allocation2 + $0x8] sm:$0xff]  ;;  %p2055_p3 = pneg %p2054_p1 }
  0xc2   : > { %v2524_v38 = vld [vmem:[#allocation2 + $0x10] sm:$0xff]  ;;  %v2530_v42 = vld [vmem:[#allocation2 + $0x18] sm:$0xff]  ;;  %p2061_p6 = por %p2060_p10, %p2059_p11 }
  0xc3   : > { %767 = vrot.lane.b32.xlu1 %v388_v1, %s2156_s26 }
  0xc4   : > { %p2062_p8 = pnand %p2061_p6, %p2055_p3 }
  0xc7   : > { %765 = vrot.lane.b32.xlu1 %v387_v3, %s2156_s26 }
  0xcb   : > { %957 = vrot.lane.b32.xlu1 %v388_v1, %s2157_s1 }
  0xcf   : > { %955 = vrot.lane.b32.xlu1 %v387_v3, %s2157_s1 }
 0x12d   : > { %v577_v14 = vpop.permute.xlu1 %576 }
 0x131   : > { %v575_v17 = vpop.permute.xlu1 %574 }
 0x135   : > { %v768_v19 = vpop.permute.xlu1 %767 }
 0x139   : > { %v766_v20 = vpop.permute.xlu1 %765 }
 0x13d   : > { %v958_v22 = vpop.permute.xlu1 %957 }
 0x141   : > { %v956_v23 = vpop.permute.xlu1 %955 }
 0x18f   : > { %v463_v5 = vpop.f32.mrb[0].mxu0 }
 0x190   : > { %v1722_v6 = vpop.f32.mrb[1].mxu0  ;;  %v468_v7 = vsel %vm381_vm0, %v463_v5, -inf }
 0x191   : > { %469 = vmax.xlane.f32.xlu0 %v468_v7  ;;  %v483_v7 = vld [vmem:[#allocation3] sm:$0xff] }
 0x21e   : > { %v470_v10 = vpop.xlane.xlu0 %469 }
 0x21f   : > { %v2491_v11 = vmax.f32 %v2488_v9, %v470_v10 }
 0x221   : > { %v472_v12 = vsub.f32 %v2488_v9, %v2491_v11  ;;  %573 = vst.msk [vmem:[#allocation2] sm:$0xff] %vm372_vm2, %v2491_v11  ;;  %477 = vperm.xlu0 %1880, %v2491_v11  }
 0x223   : > { %v473_v3 = vmul.f32 1.442695, %v472_v12  ;;  %v670_v12 = vld [vmem:[#allocation3 + $0x8] sm:$0xff] }
 0x2a0   : > { %v478_v15 = vpop.permute.xlu0 %477 }
 0x2a1   : > { %v480_v16 = vsub.f32 %v463_v5, %v478_v15  ;;  %v1157_v15 = vld [vmem:[#allocation11] sm:$0xff] }
 0x2a3   : > { %v481_v18 = vmul.f32 1.442695, %v480_v16 }
 0x2a5   : > { %1882 = vpow2.f32 %v481_v18 }
 0x2af   : > { %v1883_v21 = vpop.eup %1882 }
 0x2b0   : > { %1726 = vmatmul.mubr.msk.f32.vlgmr.msra.gmra.mrb[0].mxu1 %vm381_vm0, %v1883_v21  ;;  %v485_v47 = vsel %vm381_vm0, %v1883_v21, 0.0 }
 0x2b1   : > { %1729 = vmatpush3.xpose.msk.msra.mxu1 %vm381_vm0, %v577_v14  ;;  %1730 = vmatprep.mubr.msk.f32.mxu1 %vm2152_vm1, %v2151_v0 }
 0x2b2   : > { %1738 = vmatprep.subr.mxu1 %v2151_v0 }
 0x2b4   : > { %1731 = vmatmul.mubr.msk.f32.vlgmr.msra.gmra.mrb[2].mxu1 %vm381_vm0, %v575_v17 }
 0x2b5   : > { %1739 = vmatpush3.xpose.msk.msra.mxu1 %vm381_vm0, %v768_v19  ;;  %1740 = vmatprep.mubr.msk.f32.mxu1 %vm2152_vm1, %v2151_v0  ;;  %v861_v19 = vld [vmem:[#allocation3 + $0x10] sm:$0xff] }
 0x2b6   : > { %1748 = vmatprep.subr.mxu1 %v2151_v0 }
 0x2b8   : > { %1741 = vmatmul.mubr.msk.f32.vlgmr.msra.gmra.mrb[4].mxu1 %vm381_vm0, %v766_v20 }
 0x2b9   : > { %1749 = vmatpush3.xpose.msk.msra.mxu1 %vm381_vm0, %v958_v22  ;;  %1750 = vmatprep.mubr.msk.f32.mxu1 %vm2152_vm1, %v2151_v0 }
 0x2ba   : > { %1758 = vmatprep.subr.mxu1 %v2151_v0 }
 0x2bc   : > { %1751 = vmatmul.mubr.msk.f32.vlgmr.msra.gmra.mrb[6].mxu1 %vm381_vm0, %v956_v23 }
 0x2bd   : > { %1760 = vmatprep.mubr.msk.f32.mxu1 %vm2152_vm1, %v2151_v0 }
 0x383   : > { %v2519_v24 = vpop.f32.mrb[0].mxu1 }
 0x384   : > { %v1727_v25 = vpop.f32.mrb[1].mxu1 }
 0x385   : > { %v1051_v25 = vld [vmem:[#allocation3 + $0x18] sm:$0xff] }
 0x387   : > { %v648_v26 = vpop.f32.mrb[2].mxu1 }
 0x388   : > { %v1732_v27 = vpop.f32.mrb[3].mxu1  ;;  %v654_v28 = vsel %vm381_vm0, %v648_v26, -inf }
 0x389   : > { %655 = vmax.xlane.f32.xlu1 %v654_v28 }
 0x38b   : > { %v839_v29 = vpop.f32.mrb[4].mxu1 }
 0x38c   : > { %v1742_v30 = vpop.f32.mrb[5].mxu1  ;;  %v845_v31 = vsel %vm381_vm0, %v839_v29, -inf }
 0x38d   : > { %846 = vmax.xlane.f32.xlu0 %v845_v31  ;;  %v564_v31 = vld [vmem:[#allocation4] sm:$0xff] }
 0x38f   : > { %v1029_v32 = vpop.f32.mrb[6].mxu1 }
 0x390   : > { %v1752_v33 = vpop.f32.mrb[7].mxu1  ;;  %v1035_v34 = vsel %vm381_vm0, %v1029_v32, -inf }
 0x391   : > { %1036 = vmax.xlane.f32.xlu1 %v1035_v34 }
 0x416   : > { %v656_v36 = vpop.xlane.xlu1 %655 }
 0x417   : > { %v657_v37 = vmax.f32 %v653_v35, %v656_v36 }
 0x419   : > { %v658_v39 = vsub.f32 %v653_v35, %v657_v37  ;;  %764 = vst.msk [vmem:[#allocation2 + $0x8] sm:$0xff] %vm372_vm2, %v657_v37  ;;  %663 = vperm.xlu1 %1881, %v657_v37   ;;  %v1167_v37 = vld [vmem:[#allocation11 + $0x8] sm:$0xff] }
 0x41a   : > { %v847_v40 = vpop.xlane.xlu0 %846  ;;  %1759 = vmatpush3.msra.mxu1 %v1167_v37 }
 0x41b   : > { %v2528_v41 = vmax.f32 %v2524_v38, %v847_v40  ;;  %v659_v4 = vmul.f32 1.442695, %v658_v39  ;;  %1768 = vmatprep.subr.mxu1 %v2151_v0 }
 0x41d   : > { %v849_v43 = vsub.f32 %v2524_v38, %v2528_v41  ;;  %954 = vst.msk [vmem:[#allocation2 + $0x10] sm:$0xff] %vm372_vm2, %v2528_v41  ;;  %854 = vperm.xlu0 %1880, %v2528_v41  }
 0x41e   : > { %v1037_v44 = vpop.xlane.xlu1 %1036 }
 0x41f   : > { %v2538_v45 = vmax.f32 %v2530_v42, %v1037_v44  ;;  %v850_v9 = vmul.f32 1.442695, %v849_v43  ;;  %v1407_v43 = vld [vmem:[#allocation11 + $0x18] sm:$0xff] }
 0x421   : > { %v1039_v46 = vsub.f32 %v2530_v42, %v2538_v45  ;;  %1144 = vst.msk [vmem:[#allocation2 + $0x18] sm:$0xff] %vm372_vm2, %v2538_v45  ;;  %1044 = vperm.xlu1 %1881, %v2538_v45  }
 0x423   : > { %v1040_v11 = vmul.f32 1.442695, %v1039_v46 }
 0x425   : > { %678 = vrot.lane.b32.xlu1 %v389_v13, %s2155_s24 }
 0x429   : > { %868 = vrot.lane.b32.xlu1 %v389_v13, %s2156_s26 }
 0x42d   : > { %1058 = vrot.lane.b32.xlu1 %v389_v13, %s2157_s1 }
 0x43c   : > { %486 = vadd.xlane.f32.xlu0 %v485_v47 }
 0x498   : > { %v664_v48 = vpop.permute.xlu1 %663 }
 0x499   : > { %v666_v49 = vsub.f32 %v648_v26, %v664_v48 }
 0x49b   : > { %v667_v50 = vmul.f32 1.442695, %v666_v49 }
 0x49c   : > { %v855_v51 = vpop.permute.xlu0 %854 }
 0x49d   : > { %1884 = vpow2.f32 %v667_v50  ;;  %v857_v52 = vsub.f32 %v839_v29, %v855_v51 }
 0x49f   : > { %v858_v53 = vmul.f32 1.442695, %v857_v52 }
 0x4a0   : > { %v1045_v54 = vpop.permute.xlu1 %1044 }
 0x4a1   : > { %1886 = vpow2.f32 %v858_v53  ;;  %v1047_v55 = vsub.f32 %v1029_v32, %v1045_v54  ;;  %v945_v53 = vld [vmem:[#allocation4 + $0x10] sm:$0xff] }
 0x4a3   : > { %v1048_v56 = vmul.f32 1.442695, %v1047_v55 }
 0x4a4   : > { %v679_v57 = vpop.permute.xlu1 %678 }
 0x4a5   : > { %1888 = vpow2.f32 %v1048_v56  ;;  %1734 = vmatpush3.msra.mxu0 %v679_v57  ;;  %v1135_v57 = vld [vmem:[#allocation4 + $0x18] sm:$0xff] }
 0x4a6   : > { %1743 = vmatprep.subr.mxu0 %v2151_v0  ;;  %1890 = vpow2.f32 %v473_v3  ;;  %v1323_v3 = vld [vmem:[#allocation11 + $0x10] sm:$0xff] }
 0x4a7   : > { %v1885_v58 = vpop.eup %1884  ;;  %1892 = vpow2.f32 %v659_v4 }
 0x4a8   : > { %1736 = vmatmul.mubr.msk.f32.vlgmr.msra.gmra.mrb[2].mxu0 %vm381_vm0, %v1885_v58  ;;  %v672_v59 = vsel %vm381_vm0, %v1885_v58, 0.0  ;;  %v869_v60 = vpop.permute.xlu1 %868  ;;  %1894 = vpow2.f32 %v850_v9 }
 0x4a9   : > { %673 = vadd.xlane.f32.xlu1 %v672_v59  ;;  %1744 = vmatpush3.msra.mxu0 %v869_v60  ;;  %1896 = vpow2.f32 %v1040_v11 }
 0x4aa   : > { %1745 = vmatprep.mubr.msk.f32.mxu0 %vm2152_vm1, %v2151_v0  ;;  %1753 = vmatprep.subr.mxu0 %v2151_v0 }
 0x4ab   : > { %v1887_v61 = vpop.eup %1886 }
 0x4ac   : > { %1746 = vmatmul.mubr.msk.f32.vlgmr.msra.gmra.mrb[4].mxu0 %vm381_vm0, %v1887_v61  ;;  %v863_v62 = vsel %vm381_vm0, %v1887_v61, 0.0  ;;  %v1059_v63 = vpop.permute.xlu1 %1058 }
 0x4ad   : > { %864 = vadd.xlane.f32.xlu0 %v863_v62  ;;  %1754 = vmatpush3.msra.mxu0 %v1059_v63 }
 0x4ae   : > { %1755 = vmatprep.mubr.msk.f32.mxu0 %vm2152_vm1, %v2151_v0  ;;  %1763 = vmatprep.subr.mxu0 %v2151_v0 }
 0x4af   : > { %v1889_v1 = vpop.eup %1888 }
 0x4b0   : > { %1756 = vmatmul.mubr.msk.f32.vlgmr.msra.gmra.mrb[6].mxu0 %vm381_vm0, %v1889_v1  ;;  %v1053_v2 = vsel %vm381_vm0, %v1889_v1, 0.0  ;;  %v1891_v5 = vpop.eup %1890 }
 0x4b1   : > { %1054 = vadd.xlane.f32.xlu1 %v1053_v2  ;;  %1765 = vmatprep.mubr.msk.f32.mxu0 %vm2152_vm1, %v2151_v0  ;;  %v1893_v6 = vpop.eup %1892  ;;  %v484_v8 = vmul.f32 %v1891_v5, %v483_v7 }
 0x4b2   : > { %1764 = vmatpush3.msra.mxu0 %v1157_v15  ;;  %v671_v16 = vmul.f32 %v1893_v6, %v670_v12  ;;  %v1895_v17 = vpop.eup %1894 }
 0x4b3   : > { %1773 = vmatprep.subr.mxu0 %v2151_v0  ;;  %v862_v21 = vmul.f32 %v1895_v17, %v861_v19  ;;  %v1897_v22 = vpop.eup %1896 }
 0x4b4   : > { %v1052_v27 = vmul.f32 %v1897_v22, %v1051_v25 }
 0x4c2   : > { %567 = vperm.xlu1 %1881, %v1891_v5  }
 0x4c3   : > { %758 = vperm.xlu0 %1880, %v1893_v6  }
 0x4c9   : > { %v487_v10 = vpop.xlane.xlu0 %486 }
 0x4ca   : > { %v488_v13 = vadd.f32 %v487_v10, %v484_v8 }
 0x4cc   : > { %490 = vst.msk [vmem:[#allocation3] sm:$0xff] %vm372_vm2, %v488_v13 }
 0x4d3   : > { %v1149_v14 = vld [vmem:[#allocation3] sm:$0xff] }
 0x4d4   : > { %1152 = vperm.xlu0 %1880, %v1149_v14  }
 0x536   : > { %v674_v18 = vpop.xlane.xlu1 %673 }
 0x537   : > { %v675_v20 = vadd.f32 %v674_v18, %v671_v16  ;;  %v1689_v18 = vld [vmem:[#allocation13] ss:$0 sm:$0xff] }
 0x539   : > { %676 = vst.msk [vmem:[#allocation3 + $0x8] sm:$0xff] %vm372_vm2, %v675_v20 }
 0x53a   : > { %v865_v23 = vpop.xlane.xlu0 %864 }
 0x53b   : > { %v866_v26 = vadd.f32 %v865_v23, %v862_v21 }
 0x53d   : > { %867 = vst.msk [vmem:[#allocation3 + $0x10] sm:$0xff] %vm372_vm2, %v866_v26 }
 0x53e   : > { %v1055_v28 = vpop.xlane.xlu1 %1054 }
 0x53f   : > { %v1056_v29 = vadd.f32 %v1055_v28, %v1052_v27 }
 0x540   : > { %v1159_v30 = vld [vmem:[#allocation3 + $0x8] sm:$0xff] }
 0x541   : > { %1057 = vst.msk [vmem:[#allocation3 + $0x18] sm:$0xff] %vm372_vm2, %v1056_v29  ;;  %1162 = vperm.xlu1 %1881, %v1159_v30  }
 0x542   : > { %v568_v32 = vpop.permute.xlu1 %567  ;;  %v759_v38 = vpop.permute.xlu0 %758 }
 0x543   : > { %v570_v33 = vmul.f32 %v568_v32, %v564_v31 }
 0x544   : > { %v1315_v34 = vld [vmem:[#allocation3 + $0x10] sm:$0xff] }
 0x545   : > { %v571_v35 = vadd.f32 %v570_v33, %v2519_v24  ;;  %948 = vperm.xlu1 %1881, %v1895_v17   ;;  %1318 = vperm.xlu0 %1880, %v1315_v34   ;;  %v755_v24 = vld [vmem:[#allocation4 + $0x8] sm:$0xff] }
 0x546   : > { %v761_v44 = vmul.f32 %v759_v38, %v755_v24 }
 0x547   : > { %572 = vst.msk [vmem:[#allocation4] sm:$0xff] %vm381_vm0, %v571_v35 }
 0x548   : > { %v1399_v36 = vld [vmem:[#allocation3 + $0x18] sm:$0xff] }
 0x549   : > { %1138 = vperm.xlu1 %1881, %v1897_v22   ;;  %1402 = vperm.xlu0 %1880, %v1399_v36  }
 0x54e   : > { %v1148_v41 = vld [vmem:[#allocation4] sm:$0xff] }
 0x553   : > { %v1153_v39 = vpop.permute.xlu0 %1152 }
 0x554   : > { %1898 = vrcp.f32 %v1153_v39 }
 0x55e   : > { %v1899_v40 = vpop.eup %1898 }
 0x55f   : > { %v1156_v42 = vmul.f32 %v1899_v40, %v1148_v41 }
 0x561   : > { %1766 = vmatmul.mubr.msk.f32.vlgmr.msra.gmra.mrb[8].mxu0 %vm381_vm0, %v1156_v42 }
 0x562   : > { %1774 = vmatpush3.msra.mxu0 %v1407_v43  ;;  %1775 = vmatprep.mubr.msk.f32.mxu0 %vm2152_vm1, %v2151_v0 }
 0x57b   : > { %v750_v45 = vpop.f32.mrb[2].mxu0 }
 0x57c   : > { %v762_v46 = vadd.f32 %v761_v44, %v750_v45  ;;  %v1737_v47 = vpop.f32.mrb[3].mxu0 }
 0x57e   : > { %763 = vst.msk [vmem:[#allocation4 + $0x8] sm:$0xff] %vm381_vm0, %v762_v46 }
 0x57f   : > { %v940_v48 = vpop.f32.mrb[4].mxu0 }
 0x580   : > { %v1747_v49 = vpop.f32.mrb[5].mxu0 }
 0x583   : > { %v1130_v50 = vpop.f32.mrb[6].mxu0 }
 0x584   : > { %v1757_v51 = vpop.f32.mrb[7].mxu0 }
 0x585   : > { %v1158_v63 = vld [vmem:[#allocation4 + $0x8] sm:$0xff] }
 0x5c0   : > { %v1163_v52 = vpop.permute.xlu1 %1162 }
 0x5c1   : > { %1900 = vrcp.f32 %v1163_v52 }
 0x5c4   : > { %v949_v54 = vpop.permute.xlu1 %948  ;;  %v1319_v55 = vpop.permute.xlu0 %1318 }
 0x5c5   : > { %v951_v56 = vmul.f32 %v949_v54, %v945_v53  ;;  %1902 = vrcp.f32 %v1319_v55 }
 0x5c7   : > { %v952_v58 = vadd.f32 %v951_v56, %v940_v48 }
 0x5c8   : > { %v1139_v59 = vpop.permute.xlu1 %1138  ;;  %v1403_v60 = vpop.permute.xlu0 %1402 }
 0x5c9   : > { %953 = vst.msk [vmem:[#allocation4 + $0x10] sm:$0xff] %vm381_vm0, %v952_v58  ;;  %v1141_v61 = vmul.f32 %v1139_v59, %v1135_v57  ;;  %1904 = vrcp.f32 %v1403_v60 }
 0x5cb   : > { %v1901_v62 = vpop.eup %1900  ;;  %v1142_v1 = vadd.f32 %v1141_v61, %v1130_v50 }
 0x5cc   : > { %v1166_v2 = vmul.f32 %v1901_v62, %v1158_v63 }
 0x5cd   : > { %1143 = vst.msk [vmem:[#allocation4 + $0x18] sm:$0xff] %vm381_vm0, %v1142_v1 }
 0x5ce   : > { %1761 = vmatmul.mubr.msk.f32.vlgmr.msra.gmra.mrb[8].mxu1 %vm381_vm0, %v1166_v2 }
 0x5cf   : > { %v1903_v4 = vpop.eup %1902  ;;  %1769 = vmatpush3.msra.mxu1 %v1323_v3  ;;  %1770 = vmatprep.mubr.msk.f32.mxu1 %vm2152_vm1, %v2151_v0 }
 0x5d0   : > { %v1314_v5 = vld [vmem:[#allocation4 + $0x10] sm:$0xff] }
 0x5d1   : > { %v1322_v6 = vmul.f32 %v1903_v4, %v1314_v5 }
 0x5d3   : > { %v1905_v7 = vpop.eup %1904  ;;  %1771 = vmatmul.mubr.msk.f32.vlgmr.msra.gmra.mrb[10].mxu1 %vm381_vm0, %v1322_v6 }
 0x5d4   : > { %v1398_v8 = vld [vmem:[#allocation4 + $0x18] sm:$0xff] }
 0x5d5   : > { %v1406_v10 = vmul.f32 %v1905_v7, %v1398_v8 }
 0x5d7   : > { %1776 = vmatmul.mubr.msk.f32.vlgmr.msra.gmra.mrb[10].mxu0 %vm381_vm0, %v1406_v10 }
 0x634   : > { %v1310_v13 = vpop.f32.mrb[8].mxu0 }
 0x635   : > { %v1767_v14 = vpop.f32.mrb[9].mxu0 }
 0x6a1   : > { %v1237_v15 = vpop.f32.mrb[8].mxu1 }
 0x6a2   : > { %v1311_v9 = vadd.f32 %v1310_v13, %v1237_v15  ;;  %v1762_v11 = vpop.f32.mrb[9].mxu1 }
 0x6a6   : > { %v1393_v12 = vpop.f32.mrb[10].mxu1 }
 0x6a7   : > { %v1397_v16 = vadd.f32 %v1393_v12, %v1311_v9  ;;  %v1772_v0 = vpop.f32.mrb[11].mxu1 }
 0x6aa   : > { %v1477_v17 = vpop.f32.mrb[10].mxu0 }
 0x6ab   : > { %v1481_v19 = vadd.f32 %v1477_v17, %v1397_v16  ;;  %v1777_v20 = vpop.f32.mrb[11].mxu0 }
 0x6ad   : > { %v1489_v21 = vadd.f32 %v1689_v18, %v1481_v19 }
 0x6af   : > { %1491 = vst.msk [vmem:[%s367_s22] sm:$0xff] %vm1490_vm3, %v1489_v21 }
 0x6b0   : > { %2065 = shalt.err (!%p2062_p8)
}
 0x6b1   : > { %s2066_s16 = scalar_lea.hbm %s2597_s15, 128  ;;  %s2070_s10 = scalar_lea.hbm %s2651_s5, 256 }
 0x6b2   : > { %p2067_p0 = scmp.ne.s32.totalorder %s2597_s15, %s2066_s16  ;;  %p2071_p7 = scmp.lt.u32.totalorder %s2597_s15, %s2651_s5 }
 0x6b3   : > { %p2072_p13 = scmp.lt.u32.totalorder %s2070_s10, %s2066_s16  ;;  %p2074_p2 = scmp.lt.u32.totalorder %s2066_s16, %s2597_s15 }
 0x6b4   : > { %p2068_p5 = pnand %p2067_p0, %p2694_p4 }
 0x6b5   : > { %p2073_p9 = por %p2072_p13, %p2071_p7 }
 0x6b6   : > { %p2069_p12 = pneg %p2068_p5 }
 0x6b7   : > { %p2075_p1 = por %p2074_p2, %p2073_p9 }
 0x6b9   : > { %p2076_p3 = pnand %p2075_p1, %p2069_p12 }
 0x6bb   : > { %2079 = shalt.err (!%p2076_p3)
}
 0x6bc   : > { %1792 = dma.vmem_to_hbm [thread:$0]  (%p2694_p4), %s2599_s7, 128, %s2597_s15, %s1493_s30  }
 0x6bd PF: > { %s1519_s14 = sand.u32 1, %s2122_s18   ;;  %p2695_p11 = scmp.ne.s32.totalorder %s2671_s27, 0 }
 0x6be   : > { %p2696_p10 = scmp.ge.s32.totalorder %s2142_s23, 2  ;;  %s1520_s25 = scalar_lea.sflag [#allocation7], %s1519_s14 }
 0x6c0   : > { %p1812_p6 = pnand %p2696_p10, %p2695_p11 }
 0x6c2   : > { %2117 = dma.done.wait (!%p1812_p6), %s1520_s25, 128  }
 0x6c3   : > { %2119 = vsyncadd (!%p1812_p6), %s1520_s25, 4294967168  ;;  %s25_s23 = sadd.s32 1, %s2142_s23   ;;  %s2697_s9 = sld [smem:[#allocation21_spill]] }
 0x6c4   : > { %p22_p8 = scmp.ge.s32.totalorder %s25_s23, 4   ;;  %s2698_s21 = sld [smem:[#allocation19_spill]] }
 0x6c5   : > { %s2699_s22 = sld [smem:[#allocation20_spill]]  ;;  %s2700_s18 = smov %s2126_s19 }
 0x6c6   : > { %s2701_s19 = smov %s2130_s20  ;;  %24 = sbr.rel (!%p22_p8) target bundleno = 13 (0xd), region = 134 }
 0x6c9   : > { %s2702_s20 = smov %s2697_s9 }
 0x6cd   :  { %1525 = vsyncpa [#allocation6], 1 }
 0x6ce   :  { %1527 = vsyncpa [#allocation6 + $0x1], 1 }
 0x6cf   :  { %1528 = vsyncpa [#allocation9], 1 }
 0x6d0   :  { %1530 = vsyncpa [#allocation9 + $0x1], 1 }
 0x6d1   :  { %1531 = vsyncpa [#allocation12], 1 }
 0x6d2   :  { %1532 = vsyncpa [#allocation7], 1 }
 0x6d3   :  { %1534 = vsyncpa [#allocation7 + $0x1], 1 }

</bundles_post_ra>
